<compile_context>
chip_gen: v7x
topology: tpu7x:2x2x1
jax: 0.10.0
libtpu: 0.0.40
codegen_flags: <defaults>
</compile_context>

<pallas_src>
import jax
import jax.numpy as jnp
from jax.experimental import pallas as pl
from jax.experimental.pallas import tpu as pltpu

LANE = 128           # TPU lane width
NEG_SLOPE = 0.2      # LeakyReLU negative slope


def _round_up(n, m):
    return (n + m - 1) // m * m


def discriminator_kernel(x_ref, w1_ref, b1_ref, w2_ref, b2_ref, w3_ref, b3_ref,
                         o_ref):
    # Matmul-operand dtype (bf16 by default); accumulation is always f32.
    cd = w1_ref.dtype
    x = x_ref[...].astype(cd)          # in-kernel cast: free VPU filler

    # --- Linear 1 + LeakyReLU(0.2) ---
    h = jnp.dot(x, w1_ref[...], preferred_element_type=jnp.float32) + b1_ref[...]
    h = jnp.where(h > 0, h, NEG_SLOPE * h)

    # --- Linear 2 + LeakyReLU(0.2) ---
    h = jnp.dot(h.astype(cd), w2_ref[...],
                preferred_element_type=jnp.float32) + b2_ref[...]
    h = jnp.where(h > 0, h, NEG_SLOPE * h)

    # --- Linear 3 + Sigmoid ---
    h = jnp.dot(h.astype(cd), w3_ref[...],
                preferred_element_type=jnp.float32) + b3_ref[...]
    # sigmoid = 1 / (1 + exp(-h)): exp -> EUP, approx reciprocal -> EUP vrcp.
    o_ref[...] = pl.reciprocal(1.0 + jnp.exp(-h), approx=True).astype(o_ref.dtype)


def prepare_params(params, compute_dtype=jnp.bfloat16):
    """One-time weight prep: lane-pad output dims to multiples of 128 and cast
    matmul weights to compute_dtype. Biases stay f32. Do this ONCE, outside the
    training/inference step."""
    w1, b1, w2, b2, w3, b3 = params
    in_dim, hidden = w1.shape
    out_dim = w3.shape[1]
    hid_p = _round_up(hidden, LANE)      # 240 -> 256
    out_p = _round_up(out_dim, LANE)     # 1   -> 128 (lane-dense output slab)

    f32 = jnp.float32
    w1p = jnp.zeros((in_dim, hid_p), f32).at[:, :hidden].set(w1).astype(compute_dtype)
    w2p = jnp.zeros((hid_p, hid_p), f32).at[:hidden, :hidden].set(w2).astype(compute_dtype)
    w3p = jnp.zeros((hid_p, out_p), f32).at[:hidden, :out_dim].set(w3).astype(compute_dtype)
    b1p = jnp.zeros((1, hid_p), f32).at[:, :hidden].set(b1)
    b2p = jnp.zeros((1, hid_p), f32).at[:, :hidden].set(b2)
    b3p = jnp.zeros((1, out_p), f32).at[:, :out_dim].set(b3)
    return (w1p, b1p, w2p, b2p, w3p, b3p, out_dim)


def discriminator_forward(x, prepped, *, batch_tile=512, out_dtype=None):
    """Fused discriminator MLP forward, tiled over batch.

    x:       (B, 784) activations (any float dtype; DMA'd as-is, cast in-kernel).
    prepped: output of prepare_params() (padded weights + logical out_dim).
    """
    w1p, b1p, w2p, b2p, w3p, b3p, out_dim = prepped
    B, in_dim = x.shape
    assert in_dim == w1p.shape[0], "input feature dim mismatch"
    hid_p = w1p.shape[1]
    out_p = w3p.shape[1]
    compute_dtype = w1p.dtype
    if out_dtype is None:
        out_dtype = jnp.bfloat16 if compute_dtype == jnp.bfloat16 else jnp.float32

    # Batch tile: multiple of 128, capped at batch_tile. If the tile would
    # swallow the whole batch into grid=(1,) while B >= 256, halve it so the
    # 'parallel' batch axis can shard across both TensorCores (v7x).
    tb = _round_up(min(batch_tile, _round_up(B, LANE)), LANE)
    if B >= 2 * LANE and _round_up(B, tb) // tb < 2:
        tb = _round_up(pl.cdiv(tb, 2), LANE)
    Bp = _round_up(B, tb)

    # Only pad the batch (zero rows) when ragged; no lane padding of x.
    xp = x if Bp == B else jnp.zeros((Bp, in_dim), x.dtype).at[:B].set(x)

    grid = (Bp // tb,)

    cd_size = jnp.dtype(compute_dtype).itemsize
    weight_elems = in_dim * hid_p + hid_p * hid_p + hid_p * out_p
    cost = pl.CostEstimate(
        flops=2 * Bp * weight_elems,
        transcendentals=2 * Bp * out_p,
        bytes_accessed=(Bp * in_dim * xp.dtype.itemsize        # x
                        + weight_elems * cd_size               # weights
                        + (2 * hid_p + out_p) * 4              # biases (f32)
                        + Bp * out_p * jnp.dtype(out_dtype).itemsize),  # output
    )

    # Weights/biases are small (<1 MiB bf16) with constant index_maps, so they
    # stay resident in VMEM across all grid steps.
    full = lambda shape: pl.BlockSpec(shape, lambda i: (0, 0))

    out = pl.pallas_call(
        discriminator_kernel,
        out_shape=jax.ShapeDtypeStruct((Bp, out_p), out_dtype),
        grid_spec=pltpu.PrefetchScalarGridSpec(
            num_scalar_prefetch=0,
            grid=grid,
            in_specs=[
                pl.BlockSpec((tb, in_dim), lambda i: (i, 0)),  # x tile (784 = full minor dim)
                full((in_dim, hid_p)),                         # w1
                full((1, hid_p)),                              # b1
                full((hid_p, hid_p)),                          # w2
                full((1, hid_p)),                              # b2
                full((hid_p, out_p)),                          # w3
                full((1, out_p)),                              # b3
            ],
            out_specs=pl.BlockSpec((tb, out_p), lambda i: (i, 0)),
        ),
        compiler_params=pltpu.CompilerParams(
            dimension_semantics=("parallel",),     # batch axis -> megacore/2 TCs
            vmem_limit_bytes=24 * 1024 * 1024,     # generous for the tiny working set
        ),
        cost_estimate=cost,
    )(xp, w1p, b1p, w2p, b2p, w3p, b3p)

    # Slice away batch padding and the lane-padded output columns.
    return out[:B, :out_dim]


def init_params(key, input_dim=28 * 28, hidden_dim=240, output_dim=1):
    """Deterministic init mimicking PyTorch Linear default (uniform +-1/sqrt(fan_in))."""
    ks = jax.random.split(key, 6)

    def linear(kw, kb, fan_in, fan_out):
        bound = 1.0 / jnp.sqrt(fan_in)
        w = jax.random.uniform(kw, (fan_in, fan_out), jnp.float32, -bound, bound)
        b = jax.random.uniform(kb, (1, fan_out), jnp.float32, -bound, bound)
        return w, b

    w1, b1 = linear(ks[0], ks[1], input_dim, hidden_dim)
    w2, b2 = linear(ks[2], ks[3], hidden_dim, hidden_dim)
    w3, b3 = linear(ks[4], ks[5], hidden_dim, output_dim)
    return (w1, b1, w2, b2, w3, b3)


def reference_forward(x, params, compute_dtype=jnp.float32):
    w1, b1, w2, b2, w3, b3 = params

    def dot(a, b):
        return jnp.dot(a.astype(compute_dtype), b.astype(compute_dtype),
                       preferred_element_type=jnp.float32)

    h = dot(x, w1) + b1
    h = jnp.where(h > 0, h, NEG_SLOPE * h)
    h = dot(h, w2) + b2
    h = jnp.where(h > 0, h, NEG_SLOPE * h)
    h = dot(h, w3) + b3
    return jax.nn.sigmoid(h)


if __name__ == "__main__":
    key = jax.random.PRNGKey(0)
    kp, kx = jax.random.split(key)

    input_dim, hidden_dim, output_dim = 28 * 28, 240, 1
    batch = 8

    params = init_params(kp, input_dim, hidden_dim, output_dim)
    x = jax.random.normal(kx, (batch, input_dim), jnp.float32)

    # --- default bf16 matmul path (all generations) ---
    prep_bf16 = prepare_params(params, jnp.bfloat16)
    out_bf16 = jax.block_until_ready(discriminator_forward(x, prep_bf16))
    ref_bf16 = reference_forward(x, params, compute_dtype=jnp.bfloat16)
    assert out_bf16.shape == (batch, output_dim)
    assert jnp.allclose(out_bf16.astype(jnp.float32), ref_bf16,
                        atol=2e-2, rtol=2e-2), "bf16 mismatch"

    # --- f32 operand path (debug/precision path) ---
    prep_f32 = prepare_params(params, jnp.float32)
    out_f32 = jax.block_until_ready(discriminator_forward(x, prep_f32))
    ref_f32 = reference_forward(x, params, compute_dtype=jnp.float32)
    assert out_f32.shape == (batch, output_dim)
    assert jnp.allclose(out_f32, ref_f32, atol=5e-3, rtol=5e-3), "f32 mismatch"

    # --- ragged batch + multi-step grid (exercises batch padding & tiling) ---
    x2 = jax.random.normal(jax.random.PRNGKey(1), (300, input_dim), jnp.float32)
    out2 = jax.block_until_ready(
        discriminator_forward(x2, prep_bf16, batch_tile=256))
    ref2 = reference_forward(x2, params, compute_dtype=jnp.bfloat16)
    assert out2.shape == (300, output_dim)
    assert jnp.allclose(out2.astype(jnp.float32), ref2,
                        atol=2e-2, rtol=2e-2), "ragged-batch mismatch"

    print("KERNEL_OK")
</pallas_src>

<mosaic_0001>
module attributes {stable_mosaic.version = 11 : i64} {
  func.func @discriminator_kernel(%arg0: i32, %arg1: memref<128x784xf32, #tpu.memory_space<vmem>>, %arg2: memref<784x256xbf16, #tpu.memory_space<vmem>>, %arg3: memref<1x256xf32, #tpu.memory_space<vmem>>, %arg4: memref<256x256xbf16, #tpu.memory_space<vmem>>, %arg5: memref<1x256xf32, #tpu.memory_space<vmem>>, %arg6: memref<256x128xbf16, #tpu.memory_space<vmem>>, %arg7: memref<1x128xf32, #tpu.memory_space<vmem>>, %arg8: memref<128x128xbf16, #tpu.memory_space<vmem>>) attributes {dimension_semantics = [#tpu.dimension_semantics<parallel>], iteration_bounds = array<i64: 1>, scalar_prefetch = 0 : i64, scratch_operands = 0 : i64, tpu.core_type = #tpu.core_type<tc>, window_params = [{transform_indices = @transform_0, window_bounds = array<i64: 128, 784>}, {pipeline_mode = #tpu.pipeline_mode<synchronous>, transform_indices = @transform_1, window_bounds = array<i64: 784, 256>}, {pipeline_mode = #tpu.pipeline_mode<synchronous>, transform_indices = @transform_2, window_bounds = array<i64: 1, 256>}, {pipeline_mode = #tpu.pipeline_mode<synchronous>, transform_indices = @transform_3, window_bounds = array<i64: 256, 256>}, {pipeline_mode = #tpu.pipeline_mode<synchronous>, transform_indices = @transform_4, window_bounds = array<i64: 1, 256>}, {pipeline_mode = #tpu.pipeline_mode<synchronous>, transform_indices = @transform_5, window_bounds = array<i64: 256, 128>}, {pipeline_mode = #tpu.pipeline_mode<synchronous>, transform_indices = @transform_6, window_bounds = array<i64: 1, 128>}, {transform_indices = @transform_7, window_bounds = array<i64: 128, 128>}]} {
    %c0 = arith.constant 0 : index
    %c0_0 = arith.constant 0 : index
    %0 = vector.load %arg1[%c0, %c0_0] : memref<128x784xf32, #tpu.memory_space<vmem>>, vector<128x784xf32>
    %1 = arith.truncf %0 : vector<128x784xf32> to vector<128x784xbf16>
    %c0_1 = arith.constant 0 : index
    %c0_2 = arith.constant 0 : index
    %2 = vector.load %arg2[%c0_1, %c0_2] : memref<784x256xbf16, #tpu.memory_space<vmem>>, vector<784x256xbf16>
    %cst = arith.constant dense<0.000000e+00> : vector<128x256xf32>
    %3 = tpu.matmul %1, %2, %cst {dimension_numbers = #tpu.dot_dimension_numbers<[1], [0], [0], [1], [0, 0, 1, 1], [], []>} : vector<128x784xbf16>, vector<784x256xbf16>, vector<128x256xf32> -> vector<128x256xf32>
    %c0_3 = arith.constant 0 : index
    %c0_4 = arith.constant 0 : index
    %4 = vector.load %arg3[%c0_3, %c0_4] : memref<1x256xf32, #tpu.memory_space<vmem>>, vector<1x256xf32>
    %5 = vector.broadcast %4 : vector<1x256xf32> to vector<128x256xf32>
    %6 = arith.addf %3, %5 : vector<128x256xf32>
    %cst_5 = arith.constant 0.000000e+00 : f32
    %7 = vector.broadcast %cst_5 : f32 to vector<128x256xf32>
    %8 = arith.cmpf ogt, %6, %7 : vector<128x256xf32>
    %cst_6 = arith.constant 2.000000e-01 : f32
    %9 = vector.broadcast %cst_6 : f32 to vector<128x256xf32>
    %10 = arith.mulf %9, %6 : vector<128x256xf32>
    %11 = arith.select %8, %6, %10 : vector<128x256xi1>, vector<128x256xf32>
    %12 = arith.truncf %11 : vector<128x256xf32> to vector<128x256xbf16>
    %c0_7 = arith.constant 0 : index
    %c0_8 = arith.constant 0 : index
    %13 = vector.load %arg4[%c0_7, %c0_8] : memref<256x256xbf16, #tpu.memory_space<vmem>>, vector<256x256xbf16>
    %cst_9 = arith.constant dense<0.000000e+00> : vector<128x256xf32>
    %14 = tpu.matmul %12, %13, %cst_9 {dimension_numbers = #tpu.dot_dimension_numbers<[1], [0], [0], [1], [0, 0, 1, 1], [], []>} : vector<128x256xbf16>, vector<256x256xbf16>, vector<128x256xf32> -> vector<128x256xf32>
    %c0_10 = arith.constant 0 : index
    %c0_11 = arith.constant 0 : index
    %15 = vector.load %arg5[%c0_10, %c0_11] : memref<1x256xf32, #tpu.memory_space<vmem>>, vector<1x256xf32>
    %16 = vector.broadcast %15 : vector<1x256xf32> to vector<128x256xf32>
    %17 = arith.addf %14, %16 : vector<128x256xf32>
    %cst_12 = arith.constant 0.000000e+00 : f32
    %18 = vector.broadcast %cst_12 : f32 to vector<128x256xf32>
    %19 = arith.cmpf ogt, %17, %18 : vector<128x256xf32>
    %cst_13 = arith.constant 2.000000e-01 : f32
    %20 = vector.broadcast %cst_13 : f32 to vector<128x256xf32>
    %21 = arith.mulf %20, %17 : vector<128x256xf32>
    %22 = arith.select %19, %17, %21 : vector<128x256xi1>, vector<128x256xf32>
    %23 = arith.truncf %22 : vector<128x256xf32> to vector<128x256xbf16>
    %c0_14 = arith.constant 0 : index
    %c0_15 = arith.constant 0 : index
    %24 = vector.load %arg6[%c0_14, %c0_15] : memref<256x128xbf16, #tpu.memory_space<vmem>>, vector<256x128xbf16>
    %cst_16 = arith.constant dense<0.000000e+00> : vector<128x128xf32>
    %25 = tpu.matmul %23, %24, %cst_16 {dimension_numbers = #tpu.dot_dimension_numbers<[1], [0], [0], [1], [0, 0, 1, 1], [], []>} : vector<128x256xbf16>, vector<256x128xbf16>, vector<128x128xf32> -> vector<128x128xf32>
    %c0_17 = arith.constant 0 : index
    %c0_18 = arith.constant 0 : index
    %26 = vector.load %arg7[%c0_17, %c0_18] : memref<1x128xf32, #tpu.memory_space<vmem>>, vector<1x128xf32>
    %27 = vector.broadcast %26 : vector<1x128xf32> to vector<128x128xf32>
    %28 = arith.addf %25, %27 : vector<128x128xf32>
    %cst_19 = arith.constant 0.000000e+00 : f32
    %29 = vector.broadcast %cst_19 : f32 to vector<128x128xf32>
    %30 = arith.subf %29, %28 : vector<128x128xf32>
    %31 = math.exp %30 : vector<128x128xf32>
    %cst_20 = arith.constant 1.000000e+00 : f32
    %32 = vector.broadcast %cst_20 : f32 to vector<128x128xf32>
    %33 = arith.addf %32, %31 : vector<128x128xf32>
    %34 = tpu.reciprocal %33 {approx = true} : vector<128x128xf32> -> vector<128x128xf32>
    %35 = arith.truncf %34 : vector<128x128xf32> to vector<128x128xbf16>
    %c0_21 = arith.constant 0 : index
    %c0_22 = arith.constant 0 : index
    %36 = vector.load %arg8[%c0_21, %c0_22] : memref<128x128xbf16, #tpu.memory_space<vmem>>, vector<128x128xbf16>
    tpu.vector_store %arg8[%c0_21, %c0_22], %35 {strides = array<i32>} : memref<128x128xbf16, #tpu.memory_space<vmem>>, vector<128x128xbf16>,
    return
  }
  func.func @transform_0(%arg0: i32) -> (i32, i32) {
    %c0_i32 = arith.constant 0 : i32
    %c0_i32_0 = arith.constant 0 : i32
    return %arg0, %c0_i32 : i32, i32
  }
  func.func @transform_1(%arg0: i32) -> (i32, i32) {
    %c0_i32 = arith.constant 0 : i32
    %c0_i32_0 = arith.constant 0 : i32
    %c0_i32_1 = arith.constant 0 : i32
    return %c0_i32, %c0_i32_0 : i32, i32
  }
  func.func @transform_2(%arg0: i32) -> (i32, i32) {
    %c0_i32 = arith.constant 0 : i32
    %c0_i32_0 = arith.constant 0 : i32
    %c0_i32_1 = arith.constant 0 : i32
    return %c0_i32, %c0_i32_0 : i32, i32
  }
  func.func @transform_3(%arg0: i32) -> (i32, i32) {
    %c0_i32 = arith.constant 0 : i32
    %c0_i32_0 = arith.constant 0 : i32
    %c0_i32_1 = arith.constant 0 : i32
    return %c0_i32, %c0_i32_0 : i32, i32
  }
  func.func @transform_4(%arg0: i32) -> (i32, i32) {
    %c0_i32 = arith.constant 0 : i32
    %c0_i32_0 = arith.constant 0 : i32
    %c0_i32_1 = arith.constant 0 : i32
    return %c0_i32, %c0_i32_0 : i32, i32
  }
  func.func @transform_5(%arg0: i32) -> (i32, i32) {
    %c0_i32 = arith.constant 0 : i32
    %c0_i32_0 = arith.constant 0 : i32
    %c0_i32_1 = arith.constant 0 : i32
    return %c0_i32, %c0_i32_0 : i32, i32
  }
  func.func @transform_6(%arg0: i32) -> (i32, i32) {
    %c0_i32 = arith.constant 0 : i32
    %c0_i32_0 = arith.constant 0 : i32
    %c0_i32_1 = arith.constant 0 : i32
    return %c0_i32, %c0_i32_0 : i32, i32
  }
  func.func @transform_7(%arg0: i32) -> (i32, i32) {
    %c0_i32 = arith.constant 0 : i32
    %c0_i32_0 = arith.constant 0 : i32
    return %arg0, %c0_i32 : i32, i32
  }
}

</mosaic_0001>

<bundles_post_ra>
// kernel: tpu_custom_call.1
= control target key start
LH: loop header
LB: loop body
LE: loop exit
PB: predicated region body
PF: predicated region fallthrough
CT: control target
= control target key end

     0   :  { %s3978_s0 = inlined_call_operand.vmem [shape: f32[128,784], index: 0, kind: input, shape index: {}]   ;;  %s3979_s1 = inlined_call_operand.vmem [shape: bf16[784,256], index: 1, kind: input, shape index: {}]   ;;  %s3980_s2 = inlined_call_operand.vmem [shape: f32[1,256], index: 2, kind: input, shape index: {}]   ;;  %s3981_s3 = inlined_call_operand.vmem [shape: bf16[256,256], index: 3, kind: input, shape index: {}]   ;;  %s3982_s4 = inlined_call_operand.vmem [shape: f32[1,256], index: 4, kind: input, shape index: {}]   ;;  %s3983_s5 = inlined_call_operand.vmem [shape: bf16[256,128], index: 5, kind: input, shape index: {}]   ;;  %s3984_s6 = inlined_call_operand.vmem [shape: f32[1,128], index: 6, kind: input, shape index: {}]   ;;  %s3985_s7 = inlined_call_operand.hbm [shape: bf16[128,128], index: 7, kind: output, shape index: {}]  }
   0x1   :  { %v2652_v0 = vld [vmem:[%s3979_s1 + $0x104] ss:$8 sps:$4 sm:$0xff]   ;;  %v2654_v1 = vld [vmem:[%s3979_s1 + $0x100] ss:$8 sps:$4 sm:$0xff]   ;;  %v2655_v2 = vld [vmem:[%s3979_s1 + $0x114] ss:$8 sps:$4 sm:$0xff]  }
   0x2   :  { %934 = vmatprep.subr.bf16.mxu0 %v2652_v0  ;;  %v2657_v3 = vld [vmem:[%s3979_s1 + $0x110] ss:$8 sps:$4 sm:$0xff]   ;;  %v2658_v4 = vld [vmem:[%s3979_s1 + $0x124] ss:$8 sps:$4 sm:$0xff]   ;;  %v2660_v5 = vld [vmem:[%s3979_s1 + $0x120] ss:$8 sps:$4 sm:$0xff]  }
   0x3   :  { %935 = vmatpush1.bf16.msra.mxu0 %v2654_v1  ;;  %v2661_v6 = vld [vmem:[%s3979_s1 + $0x134] ss:$8 sps:$4 sm:$0xff]   ;;  %v2663_v7 = vld [vmem:[%s3979_s1 + $0x130] ss:$8 sps:$4 sm:$0xff]   ;;  %v2664_v8 = vld [vmem:[%s3979_s1 + $0x144] ss:$8 sps:$4 sm:$0xff]  }
   0x4   :  { %936 = vmatprep.subr.bf16.mxu0 %v2655_v2  ;;  %v2666_v9 = vld [vmem:[%s3979_s1 + $0x140] ss:$8 sps:$4 sm:$0xff]   ;;  %v2667_v10 = vld [vmem:[%s3979_s1 + $0x154] ss:$8 sps:$4 sm:$0xff]   ;;  %v2669_v11 = vld [vmem:[%s3979_s1 + $0x150] ss:$8 sps:$4 sm:$0xff]  }
   0x5   :  { %v2670_v12 = vld [vmem:[%s3979_s1 + $0x164] ss:$8 sps:$4 sm:$0xff]   ;;  %v31_v13 = vld [vmem:[%s3978_s0 + $0x18] sm:$0xff]  ;;  %v38_v14 = vld [vmem:[%s3978_s0 + $0x50] sm:$0xff] }
   0x6   :  { %v143_v15 = vpack.c.bf16 %v38_v14, %v31_v13  ;;  %v2672_v16 = vld [vmem:[%s3979_s1 + $0x160] ss:$8 sps:$4 sm:$0xff]   ;;  %v2673_v17 = vld [vmem:[%s3979_s1 + $0x174] ss:$8 sps:$4 sm:$0xff]   ;;  %v2675_v18 = vld [vmem:[%s3979_s1 + $0x170] ss:$8 sps:$4 sm:$0xff]  }
   0x7   :  { %937 = vmatpush1.bf16.msra.mxu0 %v2657_v3  ;;  %v2676_v19 = vld [vmem:[%s3979_s1 + $0x184] ss:$8 sps:$4 sm:$0xff]   ;;  %v2678_v20 = vld [vmem:[%s3979_s1 + $0x180] ss:$8 sps:$4 sm:$0xff]   ;;  %v2679_v21 = vld [vmem:[%s3979_s1 + $0x194] ss:$8 sps:$4 sm:$0xff]  }
   0x8   :  { %938 = vmatprep.subr.bf16.mxu0 %v2658_v4  ;;  %966 = vmatprep.mubr.bf16.mxu0 %v143_v15  ;;  %v2681_v22 = vld [vmem:[%s3979_s1 + $0x190] ss:$8 sps:$4 sm:$0xff]   ;;  %v2682_v23 = vld [vmem:[%s3979_s1 + $0x1a4] ss:$8 sps:$4 sm:$0xff]   ;;  %v2684_v24 = vld [vmem:[%s3979_s1 + $0x1a0] ss:$8 sps:$4 sm:$0xff]  }
   0x9   :  { %v2685_v25 = vld [vmem:[%s3979_s1 + $0x1b4] ss:$8 sps:$4 sm:$0xff]   ;;  %v2687_v26 = vld [vmem:[%s3979_s1 + $0x1b0] ss:$8 sps:$4 sm:$0xff]   ;;  %v2688_v27 = vld [vmem:[%s3979_s1 + $0x1c4] ss:$8 sps:$4 sm:$0xff]  }
   0xa   :  { %v2690_v28 = vld [vmem:[%s3979_s1 + $0x1c0] ss:$8 sps:$4 sm:$0xff]   ;;  %v2691_v29 = vld [vmem:[%s3979_s1 + $0x1d4] ss:$8 sps:$4 sm:$0xff]   ;;  %v2693_v30 = vld [vmem:[%s3979_s1 + $0x1d0] ss:$8 sps:$4 sm:$0xff]  }
   0xb   :  { %939 = vmatpush1.bf16.msra.mxu0 %v2660_v5  ;;  %v2694_v31 = vld [vmem:[%s3979_s1 + $0x1e4] ss:$8 sps:$4 sm:$0xff]   ;;  %v2750_v33 = vld [vmem:[%s3979_s1] ss:$8 sps:$4 sm:$0xff]   ;;  %v2697_v35 = vld [vmem:[%s3979_s1 + $0x1f4] ss:$8 sps:$4 sm:$0xff]  }
   0xc   :  { %940 = vmatprep.subr.bf16.mxu0 %v2661_v6  ;;  %v2745_v32 = vld [vmem:[%s3979_s1 + $0x4] ss:$8 sps:$4 sm:$0xff]   ;;  %v2696_v34 = vld [vmem:[%s3979_s1 + $0x1e0] ss:$8 sps:$4 sm:$0xff]   ;;  %v2751_v36 = vld [vmem:[%s3979_s1 + $0x14] ss:$8 sps:$4 sm:$0xff]  }
   0xd   :  { %821 = vmatprep.subr.bf16.mxu1 %v2745_v32  ;;  %v2699_v37 = vld [vmem:[%s3979_s1 + $0x1f0] ss:$8 sps:$4 sm:$0xff]   ;;  %v37_v39 = vld [vmem:[%s3978_s0 + $0x48] sm:$0xff]  ;;  %v52_v44 = vld [vmem:[%s3978_s0 + $0xc0] sm:$0xff] }
   0xe   :  { %822 = vmatpush1.bf16.msra.mxu1 %v2750_v33  ;;  %v30_v38 = vld [vmem:[%s3978_s0 + $0x10] sm:$0xff]  ;;  %v2702_v40 = vld [vmem:[%s3979_s1 + $0x204] ss:$8 sps:$4 sm:$0xff]   ;;  %v2759_v45 = vld [vmem:[%s3979_s1 + $0x20] ss:$8 sps:$4 sm:$0xff]  }
   0xf   :  { %941 = vmatpush1.bf16.msra.mxu0 %v2663_v7  ;;  %823 = vmatprep.subr.bf16.mxu1 %v2751_v36  ;;  %v2756_v41 = vld [vmem:[%s3979_s1 + $0x10] ss:$8 sps:$4 sm:$0xff]   ;;  %v45_v42 = vld [vmem:[%s3978_s0 + $0x88] sm:$0xff]  ;;  %v2760_v46 = vld [vmem:[%s3979_s1 + $0x34] ss:$8 sps:$4 sm:$0xff]   ;;  %v142_v47 = vpack.c.bf16 %v37_v39, %v30_v38 }
  0x10   :  { %942 = vmatprep.subr.bf16.mxu0 %v2664_v8  ;;  %v2757_v43 = vld [vmem:[%s3979_s1 + $0x24] ss:$8 sps:$4 sm:$0xff]   ;;  %v2700_v48 = vld [vmem:[%s3979_s1 + $0x200] ss:$8 sps:$4 sm:$0xff]   ;;  %v150_v49 = vpack.c.bf16 %v52_v44, %v45_v42  ;;  %v2705_v50 = vld [vmem:[%s3979_s1 + $0x214] ss:$8 sps:$4 sm:$0xff]  }
  0x11   :  { %v2762_v51 = vld [vmem:[%s3979_s1 + $0x30] ss:$8 sps:$4 sm:$0xff]   ;;  %v2763_v53 = vld [vmem:[%s3979_s1 + $0x44] ss:$8 sps:$4 sm:$0xff]   ;;  %v2765_v59 = vld [vmem:[%s3979_s1 + $0x40] ss:$8 sps:$4 sm:$0xff]  }
  0x12   :  { %824 = vmatpush1.bf16.msra.mxu1 %v2756_v41  ;;  %v2703_v52 = vld [vmem:[%s3979_s1 + $0x210] ss:$8 sps:$4 sm:$0xff]   ;;  %v44_v54 = vld [vmem:[%s3978_s0 + $0x80] sm:$0xff]  ;;  %v2766_v60 = vld [vmem:[%s3979_s1 + $0x54] ss:$8 sps:$4 sm:$0xff]  }
  0x13   :  { %943 = vmatpush1.bf16.msra.mxu0 %v2666_v9  ;;  %825 = vmatprep.subr.bf16.mxu1 %v2757_v43  ;;  %v51_v55 = vld [vmem:[%s3978_s0 + $0xb8] sm:$0xff]  ;;  %v2708_v56 = vld [vmem:[%s3979_s1 + $0x224] ss:$8 sps:$4 sm:$0xff]   ;;  %v66_v58 = vld [vmem:[%s3978_s0 + $0x130] sm:$0xff] }
  0x14   :  { %944 = vmatprep.subr.bf16.mxu0 %v2667_v10  ;;  %v59_v57 = vld [vmem:[%s3978_s0 + $0xf8] sm:$0xff]  ;;  %v149_v61 = vpack.c.bf16 %v51_v55, %v44_v54  ;;  %v2706_v62 = vld [vmem:[%s3979_s1 + $0x220] ss:$8 sps:$4 sm:$0xff]   ;;  %v2769_v3 = vld [vmem:[%s3979_s1 + $0x64] ss:$8 sps:$4 sm:$0xff]  }
  0x15   :  { %v157_v63 = vpack.c.bf16 %v66_v58, %v59_v57  ;;  %v2711_v0 = vld [vmem:[%s3979_s1 + $0x234] ss:$8 sps:$4 sm:$0xff]   ;;  %v2768_v1 = vld [vmem:[%s3979_s1 + $0x50] ss:$8 sps:$4 sm:$0xff]   ;;  %v65_v5 = vld [vmem:[%s3978_s0 + $0x128] sm:$0xff] }
  0x16   :  { %826 = vmatpush1.bf16.msra.mxu1 %v2759_v45  ;;  %v2709_v2 = vld [vmem:[%s3979_s1 + $0x230] ss:$8 sps:$4 sm:$0xff]   ;;  %v2714_v6 = vld [vmem:[%s3979_s1 + $0x244] ss:$8 sps:$4 sm:$0xff]   ;;  %v2771_v9 = vld [vmem:[%s3979_s1 + $0x60] ss:$8 sps:$4 sm:$0xff]  }
  0x17   :  { %945 = vmatpush1.bf16.msra.mxu0 %v2669_v11  ;;  %827 = vmatprep.subr.bf16.mxu1 %v2760_v46  ;;  %v58_v4 = vld [vmem:[%s3978_s0 + $0xf0] sm:$0xff]  ;;  %v73_v7 = vld [vmem:[%s3978_s0 + $0x168] sm:$0xff]  ;;  %v80_v8 = vld [vmem:[%s3978_s0 + $0x1a0] sm:$0xff] }
  0x18   :  { %946 = vmatprep.subr.bf16.mxu0 %v2670_v12  ;;  %v2772_v10 = vld [vmem:[%s3979_s1 + $0x74] ss:$8 sps:$4 sm:$0xff]   ;;  %v156_v11 = vpack.c.bf16 %v65_v5, %v58_v4  ;;  %v2712_v12 = vld [vmem:[%s3979_s1 + $0x240] ss:$8 sps:$4 sm:$0xff]   ;;  %v164_v13 = vpack.c.bf16 %v80_v8, %v73_v7  ;;  %v2774_v15 = vld [vmem:[%s3979_s1 + $0x70] ss:$8 sps:$4 sm:$0xff]  }
  0x19   :  { %v2717_v14 = vld [vmem:[%s3979_s1 + $0x254] ss:$8 sps:$4 sm:$0xff]   ;;  %v2781_v33 = vld [vmem:[%s3979_s1 + $0xa4] ss:$8 sps:$4 sm:$0xff]   ;;  %v2724_v43 = vld [vmem:[%s3979_s1 + $0x280] ss:$8 sps:$4 sm:$0xff]  }
  0x1a   :  { %828 = vmatpush1.bf16.msra.mxu1 %v2762_v51  ;;  %v93_v36 = vld [vmem:[%s3978_s0 + $0x208] sm:$0xff]  ;;  %v108_v39 = vld [vmem:[%s3978_s0 + $0x280] sm:$0xff]  ;;  %v2784_v41 = vld [vmem:[%s3979_s1 + $0xb4] ss:$8 sps:$4 sm:$0xff]  }
  0x1b   :  { %947 = vmatpush1.bf16.msra.mxu0 %v2672_v16  ;;  %829 = vmatprep.subr.bf16.mxu1 %v2763_v53  ;;  %v2715_v16 = vld [vmem:[%s3979_s1 + $0x250] ss:$8 sps:$4 sm:$0xff]   ;;  %v101_v38 = vld [vmem:[%s3978_s0 + $0x248] sm:$0xff]  ;;  %v2729_v45 = vld [vmem:[%s3979_s1 + $0x294] ss:$8 sps:$4 sm:$0xff]  }
  0x1c   :  { %948 = vmatprep.subr.bf16.mxu0 %v2673_v17  ;;  %v2775_v17 = vld [vmem:[%s3979_s1 + $0x84] ss:$8 sps:$4 sm:$0xff]   ;;  %v178_v44 = vpack.c.bf16 %v108_v39, %v101_v38  ;;  %v2786_v46 = vld [vmem:[%s3979_s1 + $0xb0] ss:$8 sps:$4 sm:$0xff]   ;;  %v2789_v54 = vld [vmem:[%s3979_s1 + $0xc0] ss:$8 sps:$4 sm:$0xff]  }
  0x1d   :  { %v2732_v51 = vld [vmem:[%s3979_s1 + $0x2a4] ss:$8 sps:$4 sm:$0xff]   ;;  %v122_v53 = vld [vmem:[%s3978_s0 + $0x2f0] sm:$0xff]  ;;  %v2795_v4 = vld [vmem:[%s3979_s1 + $0xe0] ss:$8 sps:$4 sm:$0xff]  }
  0x1e   :  { %830 = vmatpush1.bf16.msra.mxu1 %v2765_v59  ;;  %v2790_v55 = vld [vmem:[%s3979_s1 + $0xd4] ss:$8 sps:$4 sm:$0xff]   ;;  %v2792_v59 = vld [vmem:[%s3979_s1 + $0xd0] ss:$8 sps:$4 sm:$0xff]   ;;  %v2755_v38 = vld [vmem:[%s3979_s1 + $0x304] ss:$8 sps:$4 sm:$0xff]  }
  0x1f   :  { %949 = vmatpush1.bf16.msra.mxu0 %v2675_v18  ;;  %831 = vmatprep.subr.bf16.mxu1 %v2766_v60  ;;  %v72_v18 = vld [vmem:[%s3978_s0 + $0x160] sm:$0xff]  ;;  %v2735_v58 = vld [vmem:[%s3979_s1 + $0x2b4] ss:$8 sps:$4 sm:$0xff]  }
  0x20   :  { %950 = vmatprep.subr.bf16.mxu0 %v2676_v19  ;;  %v79_v19 = vld [vmem:[%s3978_s0 + $0x198] sm:$0xff] }
  0x21   :  { %v2796_v5 = vld [vmem:[%s3979_s1 + $0xf4] ss:$8 sps:$4 sm:$0xff]  }
  0x22   :  { %832 = vmatpush1.bf16.msra.mxu1 %v2768_v1  ;;  %v2738_v1 = vld [vmem:[%s3979_s1 + $0x2c4] ss:$8 sps:$4 sm:$0xff]   ;;  %v2741_v8 = vld [vmem:[%s3979_s1 + $0x2d4] ss:$8 sps:$4 sm:$0xff]  }
  0x23   :  { %951 = vmatpush1.bf16.msra.mxu0 %v2678_v20  ;;  %833 = vmatprep.subr.bf16.mxu1 %v2769_v3  ;;  %v2720_v20 = vld [vmem:[%s3979_s1 + $0x264] ss:$8 sps:$4 sm:$0xff]   ;;  %v47_v39 = vld [vmem:[%s3978_s0 + $0x98] sm:$0xff] }
  0x24   :  { %952 = vmatprep.subr.bf16.mxu0 %v2679_v21  ;;  %v87_v21 = vld [vmem:[%s3978_s0 + $0x1d8] sm:$0xff]  ;;  %v136_v3 = vld [vmem:[%s3978_s0 + $0x360] sm:$0xff] }
  0x26   :  { %834 = vmatpush1.bf16.msra.mxu1 %v2771_v9  ;;  %v2798_v9 = vld [vmem:[%s3979_s1 + $0xf0] ss:$8 sps:$4 sm:$0xff]  }
  0x27   :  { %953 = vmatpush1.bf16.msra.mxu0 %v2681_v22  ;;  %835 = vmatprep.subr.bf16.mxu1 %v2772_v10  ;;  %v94_v22 = vld [vmem:[%s3978_s0 + $0x210] sm:$0xff]  ;;  %v28_v10 = vld [vmem:[%s3978_s0] sm:$0xff] }
  0x28   :  { %954 = vmatprep.subr.bf16.mxu0 %v2682_v23  ;;  %v2777_v23 = vld [vmem:[%s3979_s1 + $0x80] ss:$8 sps:$4 sm:$0xff]  }
  0x2a   :  { %836 = vmatpush1.bf16.msra.mxu1 %v2774_v15  ;;  %v43_v15 = vld [vmem:[%s3978_s0 + $0x78] sm:$0xff] }
  0x2b   :  { %955 = vmatpush1.bf16.msra.mxu0 %v2684_v24  ;;  %837 = vmatprep.subr.bf16.mxu1 %v2775_v17  ;;  %v2778_v24 = vld [vmem:[%s3979_s1 + $0x94] ss:$8 sps:$4 sm:$0xff]  }
  0x2c   :  { %956 = vmatprep.subr.bf16.mxu0 %v2685_v25  ;;  %v163_v25 = vpack.c.bf16 %v79_v19, %v72_v18  ;;  %v135_v17 = vld [vmem:[%s3978_s0 + $0x358] sm:$0xff]  ;;  %v2744_v18 = vld [vmem:[%s3979_s1 + $0x2e4] ss:$8 sps:$4 sm:$0xff]  }
  0x2d   :  { %v33_v19 = vld [vmem:[%s3978_s0 + $0x28] sm:$0xff] }
  0x2e   :  { %838 = vmatpush1.bf16.msra.mxu1 %v2777_v23  ;;  %v2742_v23 = vld [vmem:[%s3979_s1 + $0x2e0] ss:$8 sps:$4 sm:$0xff]  }
  0x2f   :  { %957 = vmatpush1.bf16.msra.mxu0 %v2687_v26  ;;  %v29_v26 = vld [vmem:[%s3978_s0 + $0x8] sm:$0xff]  ;;  %839 = vmatprep.subr.bf16.mxu1 %v2778_v24 }
  0x30   :  { %958 = vmatprep.subr.bf16.mxu0 %v2688_v27  ;;  %v2718_v27 = vld [vmem:[%s3979_s1 + $0x260] ss:$8 sps:$4 sm:$0xff]  }
  0x33   :  { %959 = vmatpush1.bf16.msra.mxu0 %v2690_v28  ;;  %v171_v28 = vpack.c.bf16 %v94_v22, %v87_v21 }
  0x34   :  { %960 = vmatprep.subr.bf16.mxu0 %v2691_v29  ;;  %v36_v29 = vld [vmem:[%s3978_s0 + $0x40] sm:$0xff] }
  0x35   :  { %v141_v32 = vpack.c.bf16 %v36_v29, %v29_v26  ;;  %v42_v26 = vld [vmem:[%s3978_s0 + $0x70] sm:$0xff]  ;;  %v57_v29 = vld [vmem:[%s3978_s0 + $0xe8] sm:$0xff] }
  0x37   :  { %961 = vmatpush1.bf16.msra.mxu0 %v2693_v30  ;;  %v2723_v30 = vld [vmem:[%s3979_s1 + $0x274] ss:$8 sps:$4 sm:$0xff]   ;;  %853 = vmatprep.mubr.bf16.mxu1 %v141_v32  ;;  %v2799_v32 = vld [vmem:[%s3981_s3] ss:$8 sps:$4 sm:$0xff]  }
  0x38   :  { %962 = vmatprep.subr.bf16.mxu0 %v2694_v31  ;;  %v2780_v31 = vld [vmem:[%s3979_s1 + $0x90] ss:$8 sps:$4 sm:$0xff]  }
  0x39   :  { %840 = vmatpush1.bf16.msra.mxu1 %v2780_v31  ;;  %v2747_v31 = vld [vmem:[%s3979_s1 + $0x2f0] ss:$8 sps:$4 sm:$0xff]  }
  0x3a   :  { %841 = vmatprep.subr.bf16.mxu1 %v2781_v33  ;;  %v2801_v33 = vld [vmem:[%s3981_s3 + $0x4] ss:$8 sps:$4 sm:$0xff]  }
  0x3b   :  { %963 = vmatpush1.bf16.msra.mxu0 %v2696_v34  ;;  %v2721_v34 = vld [vmem:[%s3979_s1 + $0x270] ss:$8 sps:$4 sm:$0xff]  }
  0x3c   :  { %964 = vmatprep.subr.bf16.mxu0 %v2697_v35  ;;  %v86_v35 = vld [vmem:[%s3978_s0 + $0x1d0] sm:$0xff] }
  0x3d   :  { %v170_v42 = vpack.c.bf16 %v93_v36, %v86_v35  ;;  %v39_v35 = vld [vmem:[%s3978_s0 + $0x58] sm:$0xff] }
  0x3f   :  { %965 = vmatpush1.bf16.msra.mxu0 %v2699_v37  ;;  %v2726_v37 = vld [vmem:[%s3979_s1 + $0x284] ss:$8 sps:$4 sm:$0xff]  }
  0x40   :  { %1047 = vmatprep.subr.bf16.mxu0 %v2702_v40  ;;  %v2783_v40 = vld [vmem:[%s3979_s1 + $0xa0] ss:$8 sps:$4 sm:$0xff]  }
  0x41   :  { %842 = vmatpush1.bf16.msra.mxu1 %v2783_v40  ;;  %v54_v40 = vld [vmem:[%s3978_s0 + $0xd0] sm:$0xff] }
  0x42   :  { %967 = vmatmul.mubr.bf16.vlgmr.msra.gmra.mrb[0].mxu0 %v142_v47  ;;  %v2727_v47 = vld [vmem:[%s3979_s1 + $0x290] ss:$8 sps:$4 sm:$0xff]   ;;  %843 = vmatprep.subr.bf16.mxu1 %v2784_v41 }
  0x43   :  { %1048 = vmatpush1.bf16.msra.mxu0 %v2700_v48  ;;  %976 = vmatprep.mubr.bf16.mxu0 %v150_v49  ;;  %v100_v48 = vld [vmem:[%s3978_s0 + $0x240] sm:$0xff]  ;;  %v107_v49 = vld [vmem:[%s3978_s0 + $0x278] sm:$0xff] }
  0x44   :  { %1049 = vmatprep.subr.bf16.mxu0 %v2705_v50  ;;  %v2787_v50 = vld [vmem:[%s3979_s1 + $0xc4] ss:$8 sps:$4 sm:$0xff]   ;;  %v177_v57 = vpack.c.bf16 %v107_v49, %v100_v48  ;;  %v63_v48 = vld [vmem:[%s3978_s0 + $0x118] sm:$0xff]  ;;  %v46_v49 = vld [vmem:[%s3978_s0 + $0x90] sm:$0xff] }
  0x45   :  { %844 = vmatpush1.bf16.msra.mxu1 %v2786_v46  ;;  %v152_v46 = vpack.c.bf16 %v54_v40, %v47_v39 }
  0x46   :  { %845 = vmatprep.subr.bf16.mxu1 %v2787_v50  ;;  %v53_v50 = vld [vmem:[%s3978_s0 + $0xc8] sm:$0xff] }
  0x47   :  { %1050 = vmatpush1.bf16.msra.mxu0 %v2703_v52  ;;  %v115_v52 = vld [vmem:[%s3978_s0 + $0x2b8] sm:$0xff] }
  0x48   :  { %1051 = vmatprep.subr.bf16.mxu0 %v2708_v56  ;;  %v2730_v56 = vld [vmem:[%s3979_s1 + $0x2a0] ss:$8 sps:$4 sm:$0xff]   ;;  %v185_v60 = vpack.c.bf16 %v122_v53, %v115_v52  ;;  %v78_v52 = vld [vmem:[%s3978_s0 + $0x190] sm:$0xff] }
  0x49   :  { %846 = vmatpush1.bf16.msra.mxu1 %v2789_v54  ;;  %v2805_v53 = vld [vmem:[%s3981_s3 + $0x20] ss:$8 sps:$4 sm:$0xff]  }
  0x4a   :  { %977 = vmatmul.mubr.bf16.gmra.mrb[4].mxu0 %v149_v61  ;;  %v2733_v61 = vld [vmem:[%s3979_s1 + $0x2b0] ss:$8 sps:$4 sm:$0xff]   ;;  %847 = vmatprep.subr.bf16.mxu1 %v2790_v55  ;;  %v61_v54 = vld [vmem:[%s3978_s0 + $0x108] sm:$0xff]  ;;  %v2810_v55 = vld [vmem:[%s3981_s3 + $0x34] ss:$8 sps:$4 sm:$0xff]  }
  0x4b   :  { %1052 = vmatpush1.bf16.msra.mxu0 %v2706_v62  ;;  %986 = vmatprep.mubr.bf16.mxu0 %v157_v63  ;;  %v114_v62 = vld [vmem:[%s3978_s0 + $0x2b0] sm:$0xff]  ;;  %v121_v63 = vld [vmem:[%s3978_s0 + $0x2e8] sm:$0xff] }
  0x4c   :  { %1053 = vmatprep.subr.bf16.mxu0 %v2711_v0  ;;  %v2793_v0 = vld [vmem:[%s3979_s1 + $0xe4] ss:$8 sps:$4 sm:$0xff]   ;;  %v184_v7 = vpack.c.bf16 %v121_v63, %v114_v62 }
  0x4d   :  { %848 = vmatpush1.bf16.msra.mxu1 %v2792_v59  ;;  %v2808_v59 = vld [vmem:[%s3981_s3 + $0x30] ss:$8 sps:$4 sm:$0xff]  }
  0x4e   :  { %849 = vmatprep.subr.bf16.mxu1 %v2793_v0 }
  0x4f   :  { %1054 = vmatpush1.bf16.msra.mxu0 %v2709_v2  ;;  %v129_v2 = vld [vmem:[%s3978_s0 + $0x328] sm:$0xff] }
  0x50   :  { %1055 = vmatprep.subr.bf16.mxu0 %v2714_v6  ;;  %v2736_v6 = vld [vmem:[%s3979_s1 + $0x2c0] ss:$8 sps:$4 sm:$0xff]  }
  0x51   :  { %850 = vmatpush1.bf16.msra.mxu1 %v2795_v4 }
  0x52   :  { %987 = vmatmul.mubr.bf16.gmra.mrb[8].mxu0 %v156_v11  ;;  %v35_v11 = vld [vmem:[%s3978_s0 + $0x38] sm:$0xff]  ;;  %851 = vmatprep.subr.bf16.mxu1 %v2796_v5 }
  0x53   :  { %1056 = vmatpush1.bf16.msra.mxu0 %v2712_v12  ;;  %996 = vmatprep.mubr.bf16.mxu0 %v164_v13  ;;  %v192_v12 = vpack.c.bf16 %v136_v3, %v129_v2  ;;  %v2739_v13 = vld [vmem:[%s3979_s1 + $0x2d0] ss:$8 sps:$4 sm:$0xff]   ;;  %v140_v21 = vpack.c.bf16 %v35_v11, %v28_v10 }
  0x54   :  { %1057 = vmatprep.subr.bf16.mxu0 %v2717_v14  ;;  %v128_v14 = vld [vmem:[%s3978_s0 + $0x320] sm:$0xff] }
  0x55   :  { %852 = vmatpush1.bf16.msra.mxu1 %v2798_v9  ;;  %v191_v24 = vpack.c.bf16 %v135_v17, %v128_v14 }
  0x56   :  { %1589 = vmatprep.subr.bf16.mxu1 %v2801_v33 }
  0x57   :  { %1058 = vmatpush1.bf16.msra.mxu0 %v2715_v16  ;;  %v50_v16 = vld [vmem:[%s3978_s0 + $0xb0] sm:$0xff] }
  0x58   :  { %1059 = vmatprep.subr.bf16.mxu0 %v2720_v20  ;;  %v40_v20 = vld [vmem:[%s3978_s0 + $0x60] sm:$0xff]  ;;  %v148_v22 = vpack.c.bf16 %v50_v16, %v43_v15  ;;  %854 = vmatmul.mubr.bf16.vlgmr.msra.gmra.mrb[0].mxu1 %v140_v21 }
  0x59   :  { %1590 = vmatpush1.bf16.msra.mxu1 %v2799_v32 }
  0x5a   :  { %997 = vmatmul.mubr.bf16.gmra.mrb[12].mxu0 %v163_v25  ;;  %v2749_v25 = vld [vmem:[%s3979_s1 + $0x2f4] ss:$8 sps:$4 sm:$0xff]   ;;  %863 = vmatprep.mubr.bf16.mxu1 %v148_v22 }
  0x5b   :  { %1060 = vmatpush1.bf16.msra.mxu0 %v2718_v27  ;;  %1006 = vmatprep.mubr.bf16.mxu0 %v171_v28  ;;  %v49_v27 = vld [vmem:[%s3978_s0 + $0xa8] sm:$0xff]  ;;  %v145_v28 = vpack.c.bf16 %v40_v20, %v33_v19 }
  0x5c   :  { %1061 = vmatprep.subr.bf16.mxu0 %v2723_v30  ;;  %v64_v30 = vld [vmem:[%s3978_s0 + $0x120] sm:$0xff]  ;;  %v147_v36 = vpack.c.bf16 %v49_v27, %v42_v26 }
  0x5d   :  { %v155_v41 = vpack.c.bf16 %v64_v30, %v57_v29 }
  0x5f   :  { %1062 = vmatpush1.bf16.msra.mxu0 %v2721_v34  ;;  %v32_v34 = vld [vmem:[%s3978_s0 + $0x20] sm:$0xff] }
  0x60   :  { %1063 = vmatprep.subr.bf16.mxu0 %v2726_v37  ;;  %v2804_v37 = vld [vmem:[%s3981_s3 + $0x14] ss:$8 sps:$4 sm:$0xff]   ;;  %864 = vmatmul.mubr.bf16.gmra.mrb[4].mxu1 %v147_v36 }
  0x61   :  { %1591 = vmatprep.subr.bf16.mxu1 %v2804_v37  ;;  %873 = vmatprep.mubr.bf16.mxu1 %v155_v41 }
  0x62   :  { %1007 = vmatmul.mubr.bf16.gmra.mrb[16].mxu0 %v170_v42  ;;  %v2802_v42 = vld [vmem:[%s3981_s3 + $0x10] ss:$8 sps:$4 sm:$0xff]  }
  0x63   :  { %1064 = vmatpush1.bf16.msra.mxu0 %v2724_v43  ;;  %1016 = vmatprep.mubr.bf16.mxu0 %v178_v44  ;;  %v144_v43 = vpack.c.bf16 %v39_v35, %v32_v34  ;;  %v2807_v44 = vld [vmem:[%s3981_s3 + $0x24] ss:$8 sps:$4 sm:$0xff]  }
  0x64   :  { %1065 = vmatprep.subr.bf16.mxu0 %v2729_v45  ;;  %v2753_v45 = vld [vmem:[%s3979_s1 + $0x300] ss:$8 sps:$4 sm:$0xff]   ;;  %1592 = vmatpush1.bf16.msra.mxu1 %v2802_v42 }
  0x65   :  { %1593 = vmatprep.subr.bf16.mxu1 %v2807_v44 }
  0x67   :  { %1066 = vmatpush1.bf16.msra.mxu0 %v2727_v47  ;;  %v56_v47 = vld [vmem:[%s3978_s0 + $0xe0] sm:$0xff] }
  0x68   :  { %1067 = vmatprep.subr.bf16.mxu0 %v2732_v51  ;;  %v71_v51 = vld [vmem:[%s3978_s0 + $0x158] sm:$0xff]  ;;  %1594 = vmatpush1.bf16.msra.mxu1 %v2805_v53 }
  0x6a   :  { %1017 = vmatmul.mubr.bf16.gmra.mrb[20].mxu0 %v177_v57  ;;  %v68_v57 = vld [vmem:[%s3978_s0 + $0x140] sm:$0xff] }
  0x6b   :  { %1068 = vmatpush1.bf16.msra.mxu0 %v2730_v56  ;;  %1026 = vmatprep.mubr.bf16.mxu0 %v185_v60  ;;  %v154_v56 = vpack.c.bf16 %v63_v48, %v56_v47 }
  0x6c   :  { %1069 = vmatprep.subr.bf16.mxu0 %v2735_v58  ;;  %v162_v58 = vpack.c.bf16 %v78_v52, %v71_v51 }
  0x6f   :  { %1070 = vmatpush1.bf16.msra.mxu0 %v2733_v61 }
  0x70   :  { %1071 = vmatprep.subr.bf16.mxu0 %v2738_v1 }
  0x72   :  { %1027 = vmatmul.mubr.bf16.gmra.mrb[24].mxu0 %v184_v7 }
  0x73   :  { %1072 = vmatpush1.bf16.msra.mxu0 %v2736_v6  ;;  %1036 = vmatprep.mubr.bf16.mxu0 %v192_v12 }
  0x74   :  { %1073 = vmatprep.subr.bf16.mxu0 %v2741_v8 }
  0x77   :  { %1074 = vmatpush1.bf16.msra.mxu0 %v2739_v13 }
  0x78   :  { %1075 = vmatprep.subr.bf16.mxu0 %v2744_v18 }
  0x7a   :  { %1037 = vmatmul.mubr.bf16.gmra.mrb[28].mxu0 %v191_v24 }
  0x7b   :  { %1076 = vmatpush1.bf16.msra.mxu0 %v2742_v23  ;;  %1079 = vmatprep.mubr.bf16.mxu0 %v145_v28 }
  0x7c   :  { %1077 = vmatprep.subr.bf16.mxu0 %v2749_v25 }
  0x7f   :  { %1078 = vmatpush1.bf16.msra.mxu0 %v2747_v31 }
  0x80   :  { %1160 = vmatprep.subr.bf16.mxu0 %v2755_v38 }
  0x82   :  { %1080 = vmatmul.mubr.bf16.vlgmr.msra.gmra.mrb[0].mxu0 %v144_v43 }
  0x83   :  { %1161 = vmatpush1.bf16.msra.mxu0 %v2753_v45  ;;  %1089 = vmatprep.mubr.bf16.mxu0 %v152_v46 }
  0x84   :  { %12 = vsyncpa [#allocation3], 0  ;;  %v151_v60 = vpack.c.bf16 %v53_v50, %v46_v49  ;;  %1595 = vmatprep.subr.bf16.mxu1 %v2810_v55  ;;  %v2813_v61 = vld [vmem:[%s3981_s3 + $0x44] ss:$8 sps:$4 sm:$0xff]   ;;  %v159_v62 = vpack.c.bf16 %v68_v57, %v61_v54  ;;  %874 = vmatmul.mubr.bf16.gmra.mrb[8].mxu1 %v154_v56  ;;  %v70_v63 = vld [vmem:[%s3978_s0 + $0x150] sm:$0xff]  ;;  %vm796_vm0 = vcmask 130048  }
  0x85   :  { %883 = vmatprep.mubr.bf16.mxu1 %v162_v58  ;;  %v77_v0 = vld [vmem:[%s3978_s0 + $0x188] sm:$0xff]  ;;  %v92_v2 = vld [vmem:[%s3978_s0 + $0x200] sm:$0xff]  ;;  %1596 = vmatpush1.bf16.msra.mxu1 %v2808_v59  ;;  %v2816_v4 = vld [vmem:[%s3981_s3 + $0x54] ss:$8 sps:$4 sm:$0xff]  }
  0x86   :  { %v85_v1 = vld [vmem:[%s3978_s0 + $0x1c8] sm:$0xff]  ;;  %1597 = vmatprep.subr.bf16.mxu1 %v2813_v61  ;;  %v60_v5 = vld [vmem:[%s3978_s0 + $0x100] sm:$0xff]  ;;  %v67_v6 = vld [vmem:[%s3978_s0 + $0x138] sm:$0xff]  ;;  %v161_v7 = vpack.c.bf16 %v77_v0, %v70_v63 }
  0x87   :  { %v2811_v3 = vld [vmem:[%s3981_s3 + $0x40] ss:$8 sps:$4 sm:$0xff]   ;;  %v75_v8 = vld [vmem:[%s3978_s0 + $0x178] sm:$0xff]  ;;  %v82_v9 = vld [vmem:[%s3978_s0 + $0x1b0] sm:$0xff]  ;;  %v169_v10 = vpack.c.bf16 %v92_v2, %v85_v1  ;;  %v158_v12 = vpack.c.bf16 %v67_v6, %v60_v5 }
  0x88   :  { %v2814_v11 = vld [vmem:[%s3981_s3 + $0x50] ss:$8 sps:$4 sm:$0xff]   ;;  %v2819_v13 = vld [vmem:[%s3981_s3 + $0x64] ss:$8 sps:$4 sm:$0xff]   ;;  %v166_v14 = vpack.c.bf16 %v82_v9, %v75_v8  ;;  %v2817_v19 = vld [vmem:[%s3981_s3 + $0x60] ss:$8 sps:$4 sm:$0xff]  }
  0x89   :  { %1598 = vmatpush1.bf16.msra.mxu1 %v2811_v3  ;;  %v84_v15 = vld [vmem:[%s3978_s0 + $0x1c0] sm:$0xff]  ;;  %v91_v16 = vld [vmem:[%s3978_s0 + $0x1f8] sm:$0xff]  ;;  %v106_v18 = vld [vmem:[%s3978_s0 + $0x270] sm:$0xff] }
  0x8a   :  { %1090 = vmatmul.mubr.bf16.gmra.mrb[4].mxu0 %v151_v60  ;;  %1599 = vmatprep.subr.bf16.mxu1 %v2816_v4  ;;  %v99_v17 = vld [vmem:[%s3978_s0 + $0x238] sm:$0xff]  ;;  %v74_v21 = vld [vmem:[%s3978_s0 + $0x170] sm:$0xff]  ;;  %v81_v22 = vld [vmem:[%s3978_s0 + $0x1a8] sm:$0xff]  ;;  %v168_v23 = vpack.c.bf16 %v91_v16, %v84_v15 }
  0x8b   :  { %1099 = vmatprep.mubr.bf16.mxu0 %v159_v62  ;;  %v2822_v20 = vld [vmem:[%s3981_s3 + $0x74] ss:$8 sps:$4 sm:$0xff]   ;;  %v89_v24 = vld [vmem:[%s3978_s0 + $0x1e8] sm:$0xff]  ;;  %v96_v25 = vld [vmem:[%s3978_s0 + $0x220] sm:$0xff]  ;;  %v176_v26 = vpack.c.bf16 %v106_v18, %v99_v17  ;;  %v165_v28 = vpack.c.bf16 %v81_v22, %v74_v21 }
  0x8c   :  { %884 = vmatmul.mubr.bf16.gmra.mrb[12].mxu1 %v161_v7  ;;  %v2820_v27 = vld [vmem:[%s3981_s3 + $0x70] ss:$8 sps:$4 sm:$0xff]   ;;  %v2825_v29 = vld [vmem:[%s3981_s3 + $0x84] ss:$8 sps:$4 sm:$0xff]   ;;  %v173_v30 = vpack.c.bf16 %v96_v25, %v89_v24  ;;  %v2823_v35 = vld [vmem:[%s3981_s3 + $0x80] ss:$8 sps:$4 sm:$0xff]  }
  0x8d   :  { %893 = vmatprep.mubr.bf16.mxu1 %v169_v10  ;;  %1600 = vmatpush1.bf16.msra.mxu1 %v2814_v11  ;;  %v98_v31 = vld [vmem:[%s3978_s0 + $0x230] sm:$0xff]  ;;  %v105_v32 = vld [vmem:[%s3978_s0 + $0x268] sm:$0xff]  ;;  %v120_v34 = vld [vmem:[%s3978_s0 + $0x2e0] sm:$0xff]  ;;  %v2951_v10 = vmov 0  }
  0x8e   :  { %1601 = vmatprep.subr.bf16.mxu1 %v2819_v13  ;;  %v113_v33 = vld [vmem:[%s3978_s0 + $0x2a8] sm:$0xff]  ;;  %v2828_v36 = vld [vmem:[%s3981_s3 + $0x94] ss:$8 sps:$4 sm:$0xff]   ;;  %v88_v37 = vld [vmem:[%s3978_s0 + $0x1e0] sm:$0xff]  ;;  %v175_v39 = vpack.c.bf16 %v105_v32, %v98_v31 }
  0x8f   :  { %v95_v38 = vld [vmem:[%s3978_s0 + $0x218] sm:$0xff]  ;;  %v110_v41 = vld [vmem:[%s3978_s0 + $0x290] sm:$0xff]  ;;  %v183_v42 = vpack.c.bf16 %v120_v34, %v113_v33  ;;  %v2831_v45 = vld [vmem:[%s3981_s3 + $0xa4] ss:$8 sps:$4 sm:$0xff]  }
  0x90   :  { %v103_v40 = vld [vmem:[%s3978_s0 + $0x258] sm:$0xff]  ;;  %v172_v44 = vpack.c.bf16 %v95_v38, %v88_v37  ;;  %v112_v47 = vld [vmem:[%s3978_s0 + $0x2a0] sm:$0xff]  ;;  %v134_v50 = vld [vmem:[%s3978_s0 + $0x350] sm:$0xff] }
  0x91   :  { %1602 = vmatpush1.bf16.msra.mxu1 %v2817_v19  ;;  %v2826_v43 = vld [vmem:[%s3981_s3 + $0x90] ss:$8 sps:$4 sm:$0xff]   ;;  %v180_v46 = vpack.c.bf16 %v110_v41, %v103_v40  ;;  %v2829_v51 = vld [vmem:[%s3981_s3 + $0xa0] ss:$8 sps:$4 sm:$0xff]   ;;  %v2834_v52 = vld [vmem:[%s3981_s3 + $0xb4] ss:$8 sps:$4 sm:$0xff]  }
  0x92   :  { %1100 = vmatmul.mubr.bf16.gmra.mrb[8].mxu0 %v158_v12  ;;  %1603 = vmatprep.subr.bf16.mxu1 %v2822_v20  ;;  %v119_v48 = vld [vmem:[%s3978_s0 + $0x2d8] sm:$0xff]  ;;  %v102_v53 = vld [vmem:[%s3978_s0 + $0x250] sm:$0xff]  ;;  %v109_v54 = vld [vmem:[%s3978_s0 + $0x288] sm:$0xff] }
  0x93   :  { %1109 = vmatprep.mubr.bf16.mxu0 %v166_v14  ;;  %v127_v49 = vld [vmem:[%s3978_s0 + $0x318] sm:$0xff]  ;;  %v182_v55 = vpack.c.bf16 %v119_v48, %v112_v47  ;;  %v117_v56 = vld [vmem:[%s3978_s0 + $0x2c8] sm:$0xff]  ;;  %v124_v57 = vld [vmem:[%s3978_s0 + $0x300] sm:$0xff]  ;;  %v179_v60 = vpack.c.bf16 %v109_v54, %v102_v53 }
  0x94   :  { %894 = vmatmul.mubr.bf16.gmra.mrb[16].mxu1 %v168_v23  ;;  %v190_v58 = vpack.c.bf16 %v134_v50, %v127_v49  ;;  %v2832_v59 = vld [vmem:[%s3981_s3 + $0xb0] ss:$8 sps:$4 sm:$0xff]   ;;  %v187_v61 = vpack.c.bf16 %v124_v57, %v117_v56  ;;  %v133_v63 = vld [vmem:[%s3978_s0 + $0x348] sm:$0xff]  ;;  %v116_v0 = vld [vmem:[%s3978_s0 + $0x2c0] sm:$0xff] }
  0x95   :  { %903 = vmatprep.mubr.bf16.mxu1 %v176_v26  ;;  %1604 = vmatpush1.bf16.msra.mxu1 %v2820_v27  ;;  %v126_v62 = vld [vmem:[%s3978_s0 + $0x310] sm:$0xff]  ;;  %v123_v1 = vld [vmem:[%s3978_s0 + $0x2f8] sm:$0xff]  ;;  %v137_v8 = vld [vmem:[%s3978_s0 + $0x368] sm:$0xff] }
  0x96   :  { %1605 = vmatprep.subr.bf16.mxu1 %v2825_v29  ;;  %v189_v2 = vpack.c.bf16 %v133_v63, %v126_v62  ;;  %v131_v3 = vld [vmem:[%s3978_s0 + $0x338] sm:$0xff]  ;;  %v138_v4 = vld [vmem:[%s3978_s0 + $0x370] sm:$0xff]  ;;  %v186_v5 = vpack.c.bf16 %v123_v1, %v116_v0  ;;  %v41_v12 = vld [vmem:[%s3978_s0 + $0x68] sm:$0xff] }
  0x97   :  { %v194_v6 = vpack.c.bf16 %v138_v4, %v131_v3  ;;  %v130_v7 = vld [vmem:[%s3978_s0 + $0x330] sm:$0xff]  ;;  %v48_v14 = vld [vmem:[%s3978_s0 + $0xa0] sm:$0xff]  ;;  %v55_v15 = vld [vmem:[%s3978_s0 + $0xd8] sm:$0xff] }
  0x98   :  { %v193_v9 = vpack.c.bf16 %v137_v8, %v130_v7  ;;  %v34_v11 = vld [vmem:[%s3978_s0 + $0x30] sm:$0xff]  ;;  %v153_v16 = vpack.c.bf16 %v55_v15, %v48_v14  ;;  %v69_v18 = vld [vmem:[%s3978_s0 + $0x148] sm:$0xff]  ;;  %v76_v22 = vld [vmem:[%s3978_s0 + $0x180] sm:$0xff]  ;;  %v296_v8 = vlaneseq }
  0x99   :  { %1606 = vmatpush1.bf16.msra.mxu1 %v2823_v35  ;;  %v146_v13 = vpack.c.bf16 %v41_v12, %v34_v11  ;;  %v62_v17 = vld [vmem:[%s3978_s0 + $0x110] sm:$0xff]  ;;  %v2835_v19 = vld [vmem:[%s3981_s3 + $0xc0] ss:$8 sps:$4 sm:$0xff]   ;;  %v2837_v20 = vld [vmem:[%s3981_s3 + $0xc4] ss:$8 sps:$4 sm:$0xff]  }
  0x9a   :  { %1110 = vmatmul.mubr.bf16.gmra.mrb[12].mxu0 %v165_v28  ;;  %1607 = vmatprep.subr.bf16.mxu1 %v2828_v36  ;;  %v160_v21 = vpack.c.bf16 %v69_v18, %v62_v17  ;;  %v83_v23 = vld [vmem:[%s3978_s0 + $0x1b8] sm:$0xff]  ;;  %v90_v25 = vld [vmem:[%s3978_s0 + $0x1f0] sm:$0xff]  ;;  %v97_v26 = vld [vmem:[%s3978_s0 + $0x228] sm:$0xff] }
  0x9b   :  { %1119 = vmatprep.mubr.bf16.mxu0 %v173_v30  ;;  %v167_v24 = vpack.c.bf16 %v83_v23, %v76_v22  ;;  %v174_v27 = vpack.c.bf16 %v97_v26, %v90_v25  ;;  %v104_v28 = vld [vmem:[%s3978_s0 + $0x260] sm:$0xff]  ;;  %v111_v29 = vld [vmem:[%s3978_s0 + $0x298] sm:$0xff]  ;;  %v118_v31 = vld [vmem:[%s3978_s0 + $0x2d0] sm:$0xff] }
  0x9c   :  { %904 = vmatmul.mubr.bf16.gmra.mrb[20].mxu1 %v175_v39  ;;  %v181_v30 = vpack.c.bf16 %v111_v29, %v104_v28  ;;  %v125_v32 = vld [vmem:[%s3978_s0 + $0x308] sm:$0xff]  ;;  %v132_v34 = vld [vmem:[%s3978_s0 + $0x340] sm:$0xff]  ;;  %v139_v35 = vld [vmem:[%s3978_s0 + $0x378] sm:$0xff] }
  0x9d   :  { %913 = vmatprep.mubr.bf16.mxu1 %v183_v42  ;;  %1608 = vmatpush1.bf16.msra.mxu1 %v2826_v43  ;;  %v188_v33 = vpack.c.bf16 %v125_v32, %v118_v31  ;;  %v195_v36 = vpack.c.bf16 %v139_v35, %v132_v34  ;;  %v2840_v37 = vld [vmem:[%s3981_s3 + $0xd4] ss:$8 sps:$4 sm:$0xff]   ;;  %v2838_v38 = vld [vmem:[%s3981_s3 + $0xd0] ss:$8 sps:$4 sm:$0xff]   ;;  %v2843_v39 = vld [vmem:[%s3981_s3 + $0xe4] ss:$8 sps:$4 sm:$0xff]  }
  0x9e   :  { %1609 = vmatprep.subr.bf16.mxu1 %v2831_v45  ;;  %v2841_v40 = vld [vmem:[%s3981_s3 + $0xe0] ss:$8 sps:$4 sm:$0xff]   ;;  %v2846_v41 = vld [vmem:[%s3981_s3 + $0xf4] ss:$8 sps:$4 sm:$0xff]   ;;  %v2844_v42 = vld [vmem:[%s3981_s3 + $0xf0] ss:$8 sps:$4 sm:$0xff]  }
  0x9f   :  { %v294_v15 = vld [vmem:[%s3980_s2] sm:$0x3] }
  0xa1   :  { %1610 = vmatpush1.bf16.msra.mxu1 %v2829_v51  ;;  %v2847_v51 = vld [vmem:[%s3983_s5 + $0x40] sm:$0xff]  }
  0xa2   :  { %1120 = vmatmul.mubr.bf16.gmra.mrb[16].mxu0 %v172_v44  ;;  %1611 = vmatprep.subr.bf16.mxu1 %v2834_v52 }
  0xa3   :  { %1129 = vmatprep.mubr.bf16.mxu0 %v180_v46 }
  0xa4   :  { %914 = vmatmul.mubr.bf16.gmra.mrb[24].mxu1 %v182_v55 }
  0xa5   :  { %923 = vmatprep.mubr.bf16.mxu1 %v190_v58  ;;  %1612 = vmatpush1.bf16.msra.mxu1 %v2832_v59 }
  0xa6   :  { %1613 = vmatprep.subr.bf16.mxu1 %v2837_v20 }
  0xa9   :  { %1614 = vmatpush1.bf16.msra.mxu1 %v2835_v19 }
  0xaa   :  { %1130 = vmatmul.mubr.bf16.gmra.mrb[20].mxu0 %v179_v60  ;;  %1615 = vmatprep.subr.bf16.mxu1 %v2840_v37 }
  0xab   :  { %1139 = vmatprep.mubr.bf16.mxu0 %v187_v61 }
  0xac   :  { %924 = vmatmul.mubr.bf16.gmra.mrb[28].mxu1 %v189_v2 }
  0xad   :  { %1616 = vmatpush1.bf16.msra.mxu1 %v2838_v38 }
  0xae   :  { %1617 = vmatprep.subr.bf16.mxu1 %v2843_v39 }
  0xb1   :  { %1618 = vmatpush1.bf16.msra.mxu1 %v2841_v40 }
  0xb2   :  { %1140 = vmatmul.mubr.bf16.gmra.mrb[24].mxu0 %v186_v5  ;;  %1619 = vmatprep.subr.bf16.mxu1 %v2846_v41 }
  0xb3   :  { %1149 = vmatprep.mubr.bf16.mxu0 %v194_v6 }
  0xb5   :  { %1620 = vmatpush1.bf16.msra.mxu1 %v2844_v42 }
  0xb6   :  { %2456 = vmatprep.subr.bf16.mxu1 %v2847_v51 }
  0xba   :  { %1150 = vmatmul.mubr.bf16.gmra.mrb[28].mxu0 %v193_v9 }
  0xbb   :  { %1192 = vmatprep.mubr.bf16.mxu0 %v2951_v10 }
  0xc2   :  { %2320 = vmatmul.mubr.msk.bf16.vlgmr.msra.gmra.mrb[0].mxu0 %vm796_vm0, %v146_v13  ;;  %v3784_v13 = vshrl.u32 %v296_v8, 7 }
  0xc3   :  { %1202 = vmatprep.mubr.bf16.mxu0 %v2951_v10 }
  0xc4   :  { %v298_v14 = vsub.s32 0, %v3784_v13 }
  0xc6   :  { %v3793_v17 = vrot.slane %v294_v15, %v298_v14 }
  0xca   :  { %2321 = vmatmul.mubr.msk.bf16.gmra.mrb[4].mxu0 %vm796_vm0, %v153_v16  ;;  %v302_v16 = vsub.s32 1, %v3784_v13 }
  0xcb   :  { %1212 = vmatprep.mubr.bf16.mxu0 %v2951_v10 }
  0xcc   :  { %v3797_v18 = vrot.slane %v294_v15, %v302_v16  ;;  %v2849_v15 = vld [vmem:[%s3983_s5 + $0x48] sm:$0xff]  }
  0xd2   :  { %2322 = vmatmul.mubr.msk.bf16.gmra.mrb[8].mxu0 %vm796_vm0, %v160_v21 }
  0xd3   :  { %1222 = vmatprep.mubr.bf16.mxu0 %v2951_v10 }
  0xda   :  { %2323 = vmatmul.mubr.msk.bf16.gmra.mrb[12].mxu0 %vm796_vm0, %v167_v24 }
  0xdb   :  { %1232 = vmatprep.mubr.bf16.mxu0 %v2951_v10 }
  0xe2   :  { %2324 = vmatmul.mubr.msk.bf16.gmra.mrb[16].mxu0 %vm796_vm0, %v174_v27 }
  0xe3   :  { %1242 = vmatprep.mubr.bf16.mxu0 %v2951_v10 }
  0xea   :  { %2325 = vmatmul.mubr.msk.bf16.gmra.mrb[20].mxu0 %vm796_vm0, %v181_v30 }
  0xeb   :  { %1252 = vmatprep.mubr.bf16.mxu0 %v2951_v10 }
  0xf2   :  { %2326 = vmatmul.mubr.msk.bf16.gmra.mrb[24].mxu0 %vm796_vm0, %v188_v33 }
  0xf3   :  { %1262 = vmatprep.mubr.bf16.mxu0 %v2951_v10 }
  0xfa   :  { %2327 = vmatmul.mubr.msk.bf16.gmra.mrb[28].mxu0 %vm796_vm0, %v195_v36 }
 0x12b   :  { %v855_v43 = vpop.f32.mrb[0].mxu1 }
 0x12c   :  { %v857_v44 = vpop.f32.mrb[1].mxu1  ;;  %v856_v19 = vadd.f32 %v855_v43, %v3793_v17 }
 0x12d   :  { %v859_v45 = vpop.f32.mrb[2].mxu1  ;;  %v858_v20 = vadd.f32 %v857_v44, %v3797_v18 }
 0x12e   :  { %v861_v46 = vpop.f32.mrb[3].mxu1  ;;  %v860_v22 = vadd.f32 %v859_v45, %v3793_v17 }
 0x12f   :  { %v862_v25 = vadd.f32 %v861_v46, %v3797_v18 }
 0x133   :  { %v865_v47 = vpop.f32.mrb[4].mxu1 }
 0x134   :  { %v867_v48 = vpop.f32.mrb[5].mxu1  ;;  %v866_v34 = vadd.f32 %v865_v47, %v3793_v17  ;;  %v2848_v47 = vld [vmem:[%s3983_s5] sm:$0xff]  }
 0x135   :  { %v3729_v49 = vpop.f32.mrb[6].mxu1  ;;  %v868_v36 = vadd.f32 %v867_v48, %v3797_v18 }
 0x136   :  { %v3731_v50 = vpop.f32.mrb[7].mxu1  ;;  %v870_v43 = vadd.f32 %v3729_v49, %v3793_v17 }
 0x137   :  { %v872_v51 = vadd.f32 %v3731_v50, %v3797_v18 }
 0x157   :  { %v3736_v52 = vpop.f32.mrb[8].mxu1 }
 0x158   :  { %v3738_v53 = vpop.f32.mrb[9].mxu1  ;;  %v876_v50 = vadd.f32 %v3736_v52, %v3793_v17 }
 0x159   :  { %v3740_v54 = vpop.f32.mrb[10].mxu1 }
 0x15a   :  { %v3742_v55 = vpop.f32.mrb[11].mxu1 }
 0x15f   :  { %v3744_v56 = vpop.f32.mrb[12].mxu1 }
 0x160   :  { %v3746_v57 = vpop.f32.mrb[13].mxu1 }
 0x161   :  { %v3748_v58 = vpop.f32.mrb[14].mxu1 }
 0x162   :  { %v3750_v59 = vpop.f32.mrb[15].mxu1 }
 0x167   :  { %v3752_v60 = vpop.f32.mrb[16].mxu1 }
 0x168   :  { %v3754_v61 = vpop.f32.mrb[17].mxu1 }
 0x169   :  { %v3756_v62 = vpop.f32.mrb[18].mxu1 }
 0x16a   :  { %v3758_v63 = vpop.f32.mrb[19].mxu1 }
 0x16f   :  { %v3760_v0 = vpop.f32.mrb[20].mxu1 }
 0x170   :  { %v3762_v1 = vpop.f32.mrb[21].mxu1 }
 0x171   :  { %v3764_v2 = vpop.f32.mrb[22].mxu1 }
 0x172   :  { %v3766_v3 = vpop.f32.mrb[23].mxu1 }
 0x177   :  { %v3768_v4 = vpop.f32.mrb[24].mxu1 }
 0x178   :  { %v3770_v5 = vpop.f32.mrb[25].mxu1 }
 0x179   :  { %v3772_v6 = vpop.f32.mrb[26].mxu1 }
 0x17a   :  { %v3774_v7 = vpop.f32.mrb[27].mxu1 }
 0x17f   :  { %v3776_v9 = vpop.f32.mrb[28].mxu1 }
 0x180   :  { %v3778_v10 = vpop.f32.mrb[29].mxu1 }
 0x181   :  { %v3780_v11 = vpop.f32.mrb[30].mxu1 }
 0x182   :  { %v3782_v12 = vpop.f32.mrb[31].mxu1 }
 0x195   :  { %v1194_v21 = vpop.f32.mrb[0].mxu0 }
 0x196   :  { %v2521_v23 = vadd.f32 %v1194_v21, %v856_v19  ;;  %v1196_v24 = vpop.f32.mrb[1].mxu0 }
 0x197   :  { %v2523_v26 = vadd.f32 %v1196_v24, %v858_v20  ;;  %v1198_v27 = vpop.f32.mrb[2].mxu0  ;;  %v2850_v24 = vld [vmem:[%s3983_s5 + $0x8] sm:$0xff]  }
 0x198   :  { %v1305_v28 = vmul.f32 0.2, %v2521_v23  ;;  %v2525_v29 = vadd.f32 %v1198_v27, %v860_v22  ;;  %v1200_v30 = vpop.f32.mrb[3].mxu0  ;;  %vm1273_vm1 = vcmp.gt.f32.partialorder %v2521_v23, 0.0  ;;  %v2851_v27 = vld [vmem:[%s3983_s5 + $0x50] sm:$0xff]  }
 0x199   :  { %v1306_v31 = vmul.f32 0.2, %v2523_v26  ;;  %v2527_v32 = vadd.f32 %v1200_v30, %v862_v25  ;;  %vm1274_vm2 = vcmp.gt.f32.partialorder %v2523_v26, 0.0 }
 0x19a   :  { %vm1275_vm3 = vcmp.gt.f32.partialorder %v2525_v29, 0.0  ;;  %v1307_v33 = vmul.f32 0.2, %v2525_v29  ;;  %v1337_v37 = vsel %vm1273_vm1, %v2521_v23, %v1305_v28 }
 0x19b   :  { %vm1276_vm4 = vcmp.gt.f32.partialorder %v2527_v32, 0.0  ;;  %v1308_v35 = vmul.f32 0.2, %v2527_v32  ;;  %v1338_v41 = vsel %vm1274_vm2, %v2523_v26, %v1306_v31  ;;  %v878_v26 = vadd.f32 %v3738_v53, %v3797_v18  ;;  %v2852_v53 = vld [vmem:[%s3983_s5 + $0x10] sm:$0xff]  }
 0x19c   :  { %v1339_v38 = vsel %vm1275_vm3, %v2525_v29, %v1307_v33  ;;  %v880_v33 = vadd.f32 %v3740_v54, %v3793_v17 }
 0x19d   :  { %v1369_v39 = vpack.c.bf16 %v1339_v38, %v1337_v37  ;;  %v1204_v40 = vpop.f32.mrb[4].mxu0  ;;  %v1340_v42 = vsel %vm1276_vm4, %v2527_v32, %v1308_v35  ;;  %v882_v37 = vadd.f32 %v3742_v55, %v3797_v18  ;;  %v886_v55 = vadd.f32 %v3744_v56, %v3793_v17 }
 0x19e   :  { %v2529_v44 = vadd.f32 %v1204_v40, %v866_v34  ;;  %v1206_v45 = vpop.f32.mrb[5].mxu0  ;;  %v1370_v46 = vpack.c.bf16 %v1340_v42, %v1338_v41  ;;  %v2853_v40 = vld [vmem:[%s3983_s5 + $0x58] sm:$0xff]  }
 0x19f   :  { %v2531_v48 = vadd.f32 %v1206_v45, %v868_v36  ;;  %v1208_v8 = vpop.f32.mrb[6].mxu0 }
 0x1a0   :  { %v1309_v19 = vmul.f32 0.2, %v2529_v44  ;;  %v2533_v20 = vadd.f32 %v1208_v8, %v870_v43  ;;  %v1210_v21 = vpop.f32.mrb[7].mxu0  ;;  %1621 = vmatprep.mubr.bf16.mxu1 %v1370_v46  ;;  %vm1277_vm5 = vcmp.gt.f32.partialorder %v2529_v44, 0.0  ;;  %v2854_v46 = vld [vmem:[%s3983_s5 + $0x18] sm:$0xff]  }
 0x1a1   :  { %v1310_v49 = vmul.f32 0.2, %v2531_v48  ;;  %v2535_v22 = vadd.f32 %v1210_v21, %v872_v51  ;;  %1622 = vmatmul.mubr.bf16.vlgmr.msra.gmra.mrb[32].mxu1 %v1369_v39  ;;  %vm1278_vm6 = vcmp.gt.f32.partialorder %v2531_v48, 0.0  ;;  %v888_v51 = vadd.f32 %v3746_v57, %v3797_v18  ;;  %v2856_v57 = vld [vmem:[%s3983_s5 + $0x20] sm:$0xff]  }
 0x1a2   :  { %vm1279_vm7 = vcmp.gt.f32.partialorder %v2533_v20, 0.0  ;;  %v1311_v23 = vmul.f32 0.2, %v2533_v20  ;;  %2457 = vmatpush3.bf16.msra.mxu1 %v2848_v47  ;;  %v1341_v28 = vsel %vm1277_vm5, %v2529_v44, %v1309_v19 }
 0x1a3   :  { %vm1280_vm8 = vcmp.gt.f32.partialorder %v2535_v22, 0.0  ;;  %v1312_v25 = vmul.f32 0.2, %v2535_v22  ;;  %2458 = vmatprep.subr.bf16.mxu1 %v2849_v15  ;;  %v1342_v31 = vsel %vm1278_vm6, %v2531_v48, %v1310_v49  ;;  %v2855_v48 = vld [vmem:[%s3983_s5 + $0x60] sm:$0xff]   ;;  %v890_v49 = vadd.f32 %v3748_v58, %v3793_v17 }
 0x1a4   :  { %v1343_v29 = vsel %vm1279_vm7, %v2533_v20, %v1311_v23 }
 0x1a5   :  { %v1214_v30 = vpop.f32.mrb[8].mxu0  ;;  %v1344_v52 = vsel %vm1280_vm8, %v2535_v22, %v1312_v25  ;;  %v1371_v32 = vpack.c.bf16 %v1343_v29, %v1341_v28 }
 0x1a6   :  { %v2537_v34 = vadd.f32 %v1214_v30, %v876_v50  ;;  %v1216_v35 = vpop.f32.mrb[9].mxu0  ;;  %v1372_v36 = vpack.c.bf16 %v1344_v52, %v1342_v31  ;;  %2459 = vmatpush3.bf16.msra.mxu1 %v2850_v24  ;;  %v892_v24 = vadd.f32 %v3750_v59, %v3797_v18  ;;  %v896_v59 = vadd.f32 %v3752_v60, %v3793_v17 }
 0x1a7   :  { %v2539_v38 = vadd.f32 %v1216_v35, %v878_v26  ;;  %v1218_v39 = vpop.f32.mrb[10].mxu0  ;;  %2460 = vmatprep.subr.bf16.mxu1 %v2851_v27  ;;  %v2857_v27 = vld [vmem:[%s3983_s5 + $0x68] sm:$0xff]   ;;  %v2859_v35 = vld [vmem:[%s3983_s5 + $0x70] sm:$0xff]  }
 0x1a8   :  { %v1313_v41 = vmul.f32 0.2, %v2537_v34  ;;  %v2541_v54 = vadd.f32 %v1218_v39, %v880_v33  ;;  %v1220_v42 = vpop.f32.mrb[11].mxu0  ;;  %1631 = vmatprep.mubr.bf16.mxu1 %v1372_v36  ;;  %vm1281_vm9 = vcmp.gt.f32.partialorder %v2537_v34, 0.0 }
 0x1a9   :  { %v1314_v43 = vmul.f32 0.2, %v2539_v38  ;;  %v2543_v44 = vadd.f32 %v1220_v42, %v882_v37  ;;  %1632 = vmatmul.mubr.bf16.gmra.mrb[36].mxu1 %v1371_v32  ;;  %vm1282_vm10 = vcmp.gt.f32.partialorder %v2539_v38, 0.0  ;;  %v2858_v32 = vld [vmem:[%s3983_s5 + $0x28] sm:$0xff]  }
 0x1aa   :  { %vm1283_vm11 = vcmp.gt.f32.partialorder %v2541_v54, 0.0  ;;  %v1315_v45 = vmul.f32 0.2, %v2541_v54  ;;  %2461 = vmatpush3.bf16.msra.mxu1 %v2852_v53  ;;  %v1345_v8 = vsel %vm1281_vm9, %v2537_v34, %v1313_v41  ;;  %v898_v34 = vadd.f32 %v3754_v61, %v3797_v18  ;;  %v2860_v61 = vld [vmem:[%s3983_s5 + $0x30] sm:$0xff]  }
 0x1ab   :  { %vm1284_vm12 = vcmp.gt.f32.partialorder %v2543_v44, 0.0  ;;  %v1316_v47 = vmul.f32 0.2, %v2543_v44  ;;  %2462 = vmatprep.subr.bf16.mxu1 %v2853_v40  ;;  %v1346_v20 = vsel %vm1282_vm10, %v2539_v38, %v1314_v43  ;;  %v900_v40 = vadd.f32 %v3756_v62, %v3793_v17 }
 0x1ac   :  { %v1347_v15 = vsel %vm1283_vm11, %v2541_v54, %v1315_v45  ;;  %v902_v43 = vadd.f32 %v3758_v63, %v3797_v18 }
 0x1ad   :  { %v1224_v19 = vpop.f32.mrb[12].mxu0  ;;  %v1348_v56 = vsel %vm1284_vm12, %v2543_v44, %v1316_v47  ;;  %v1373_v21 = vpack.c.bf16 %v1347_v15, %v1345_v8  ;;  %v906_v8 = vadd.f32 %v3760_v0, %v3793_v17  ;;  %v908_v15 = vadd.f32 %v3762_v1, %v3797_v18 }
 0x1ae   :  { %v2545_v22 = vadd.f32 %v1224_v19, %v886_v55  ;;  %v1226_v23 = vpop.f32.mrb[13].mxu0  ;;  %v1374_v50 = vpack.c.bf16 %v1348_v56, %v1346_v20  ;;  %2463 = vmatpush3.bf16.msra.mxu1 %v2854_v46  ;;  %v912_v0 = vadd.f32 %v3766_v3, %v3797_v18  ;;  %v918_v3 = vadd.f32 %v3770_v5, %v3797_v18 }
 0x1af   :  { %v2547_v25 = vadd.f32 %v1226_v23, %v888_v51  ;;  %v1228_v26 = vpop.f32.mrb[14].mxu0  ;;  %2464 = vmatprep.subr.bf16.mxu1 %v2855_v48  ;;  %v910_v23 = vadd.f32 %v3764_v2, %v3793_v17  ;;  %v916_v2 = vadd.f32 %v3768_v4, %v3793_v17  ;;  %v922_v4 = vadd.f32 %v3774_v7, %v3797_v18 }
 0x1b0   :  { %v1317_v28 = vmul.f32 0.2, %v2545_v22  ;;  %v2549_v58 = vadd.f32 %v1228_v26, %v890_v49  ;;  %v1230_v29 = vpop.f32.mrb[15].mxu0  ;;  %1641 = vmatprep.mubr.bf16.mxu1 %v1374_v50  ;;  %vm1285_vm13 = vcmp.gt.f32.partialorder %v2545_v22, 0.0  ;;  %v928_v7 = vadd.f32 %v3778_v10, %v3797_v18 }
 0x1b1   :  { %v1318_v30 = vmul.f32 0.2, %v2547_v25  ;;  %v2551_v31 = vadd.f32 %v1230_v29, %v892_v24  ;;  %1642 = vmatmul.mubr.bf16.gmra.mrb[40].mxu1 %v1373_v21  ;;  %vm1286_vm14 = vcmp.gt.f32.partialorder %v2547_v25, 0.0 }
 0x1b2   :  { %vm1287_vm15 = vcmp.gt.f32.partialorder %v2549_v58, 0.0  ;;  %v1319_v52 = vmul.f32 0.2, %v2549_v58  ;;  %2465 = vmatpush3.bf16.msra.mxu1 %v2856_v57  ;;  %v1349_v36 = vsel %vm1285_vm13, %v2545_v22, %v1317_v28 }
 0x1b3   :  { %vm1288_vm0 = vcmp.gt.f32.partialorder %v2551_v31, 0.0  ;;  %v1320_v33 = vmul.f32 0.2, %v2551_v31  ;;  %2466 = vmatprep.subr.bf16.mxu1 %v2857_v27  ;;  %v1350_v38 = vsel %vm1286_vm14, %v2547_v25, %v1318_v30 }
 0x1b4   :  { %v1351_v53 = vsel %vm1287_vm15, %v2549_v58, %v1319_v52 }
 0x1b5   :  { %v1234_v37 = vpop.f32.mrb[16].mxu0  ;;  %v1352_v60 = vsel %vm1288_vm0, %v2551_v31, %v1320_v33  ;;  %v1375_v39 = vpack.c.bf16 %v1351_v53, %v1349_v36  ;;  %v920_v36 = vadd.f32 %v3772_v6, %v3793_v17  ;;  %v926_v6 = vadd.f32 %v3776_v9, %v3793_v17 }
 0x1b6   :  { %v2553_v41 = vadd.f32 %v1234_v37, %v896_v59  ;;  %v1236_v54 = vpop.f32.mrb[17].mxu0  ;;  %v1376_v42 = vpack.c.bf16 %v1352_v60, %v1350_v38  ;;  %2467 = vmatpush3.bf16.msra.mxu1 %v2858_v32  ;;  %v932_v9 = vadd.f32 %v3782_v12, %v3797_v18 }
 0x1b7   :  { %v2555_v44 = vadd.f32 %v1236_v54, %v898_v34  ;;  %v1238_v45 = vpop.f32.mrb[18].mxu0  ;;  %2468 = vmatprep.subr.bf16.mxu1 %v2859_v35 }
 0x1b8   :  { %v1321_v55 = vmul.f32 0.2, %v2553_v41  ;;  %v2557_v46 = vadd.f32 %v1238_v45, %v900_v40  ;;  %v1240_v47 = vpop.f32.mrb[19].mxu0  ;;  %1651 = vmatprep.mubr.bf16.mxu1 %v1376_v42  ;;  %vm1289_vm1 = vcmp.gt.f32.partialorder %v2553_v41, 0.0 }
 0x1b9   :  { %v1322_v62 = vmul.f32 0.2, %v2555_v44  ;;  %v2559_v51 = vadd.f32 %v1240_v47, %v902_v43  ;;  %1652 = vmatmul.mubr.bf16.gmra.mrb[44].mxu1 %v1375_v39  ;;  %vm1290_vm2 = vcmp.gt.f32.partialorder %v2555_v44, 0.0 }
 0x1ba   :  { %vm1291_vm3 = vcmp.gt.f32.partialorder %v2557_v46, 0.0  ;;  %v1323_v48 = vmul.f32 0.2, %v2557_v46  ;;  %2469 = vmatpush3.bf16.msra.mxu1 %v2860_v61  ;;  %v1353_v19 = vsel %vm1289_vm1, %v2553_v41, %v1321_v55 }
 0x1bb   :  { %vm1292_vm4 = vcmp.gt.f32.partialorder %v2559_v51, 0.0  ;;  %v1324_v63 = vmul.f32 0.2, %v2559_v51  ;;  %v1354_v21 = vsel %vm1290_vm2, %v2555_v44, %v1322_v62 }
 0x1bc   :  { %v1355_v20 = vsel %vm1291_vm3, %v2557_v46, %v1323_v48 }
 0x1bd   :  { %v1244_v56 = vpop.f32.mrb[20].mxu0  ;;  %v1356_v49 = vsel %vm1292_vm4, %v2559_v51, %v1324_v63  ;;  %v1377_v22 = vpack.c.bf16 %v1355_v20, %v1353_v19  ;;  %v930_v51 = vadd.f32 %v3780_v11, %v3793_v17 }
 0x1be   :  { %v2561_v50 = vadd.f32 %v1244_v56, %v906_v8  ;;  %v1246_v57 = vpop.f32.mrb[21].mxu0  ;;  %v1378_v24 = vpack.c.bf16 %v1356_v49, %v1354_v21 }
 0x1bf   :  { %v2563_v25 = vadd.f32 %v1246_v57, %v908_v15  ;;  %v1248_v26 = vpop.f32.mrb[22].mxu0 }
 0x1c0   :  { %v1325_v27 = vmul.f32 0.2, %v2561_v50  ;;  %v2565_v28 = vadd.f32 %v1248_v26, %v910_v23  ;;  %v1250_v1 = vpop.f32.mrb[23].mxu0  ;;  %1661 = vmatprep.mubr.bf16.mxu1 %v1378_v24  ;;  %vm1293_vm5 = vcmp.gt.f32.partialorder %v2561_v50, 0.0  ;;  %v2861_v24 = vld [vmem:[%s3983_s5 + $0x78] sm:$0xff]  }
 0x1c1   :  { %v1326_v58 = vmul.f32 0.2, %v2563_v25  ;;  %v2567_v29 = vadd.f32 %v1250_v1, %v912_v0  ;;  %1662 = vmatmul.mubr.bf16.gmra.mrb[48].mxu1 %v1377_v22  ;;  %vm1294_vm6 = vcmp.gt.f32.partialorder %v2563_v25, 0.0  ;;  %v2862_v0 = vld [vmem:[%s3983_s5 + $0x38] sm:$0xff]   ;;  %2470 = vmatprep.subr.bf16.mxu1 %v2861_v24 }
 0x1c2   :  { %vm1295_vm7 = vcmp.gt.f32.partialorder %v2565_v28, 0.0  ;;  %v1327_v30 = vmul.f32 0.2, %v2565_v28  ;;  %v1357_v52 = vsel %vm1293_vm5, %v2561_v50, %v1325_v27  ;;  %2471 = vmatpush3.bf16.msra.mxu1 %v2862_v0 }
 0x1c3   :  { %vm1296_vm8 = vcmp.gt.f32.partialorder %v2567_v29, 0.0  ;;  %v1328_v31 = vmul.f32 0.2, %v2567_v29  ;;  %v1358_v33 = vsel %vm1294_vm6, %v2563_v25, %v1326_v58  ;;  %v1417_v25 = vld [vmem:[%s3982_s4] sm:$0x3] }
 0x1c4   :  { %v1359_v59 = vsel %vm1295_vm7, %v2565_v28, %v1327_v30  ;;  %v3907_v26 = vrot.slane %v1417_v25, %v298_v14  ;;  %v3911_v27 = vrot.slane %v1417_v25, %v302_v16 }
 0x1c5   :  { %v1254_v32 = vpop.f32.mrb[24].mxu0  ;;  %v1360_v34 = vsel %vm1296_vm8, %v2567_v29, %v1328_v31  ;;  %v1379_v35 = vpack.c.bf16 %v1359_v59, %v1357_v52 }
 0x1c6   :  { %v2569_v53 = vadd.f32 %v1254_v32, %v916_v2  ;;  %v1256_v37 = vpop.f32.mrb[25].mxu0  ;;  %v1380_v38 = vpack.c.bf16 %v1360_v34, %v1358_v33 }
 0x1c7   :  { %v2571_v60 = vadd.f32 %v1256_v37, %v918_v3  ;;  %v1258_v39 = vpop.f32.mrb[26].mxu0 }
 0x1c8   :  { %v1329_v40 = vmul.f32 0.2, %v2569_v53  ;;  %v2573_v41 = vadd.f32 %v1258_v39, %v920_v36  ;;  %v1260_v5 = vpop.f32.mrb[27].mxu0  ;;  %1671 = vmatprep.mubr.bf16.mxu1 %v1380_v38  ;;  %vm1297_vm9 = vcmp.gt.f32.partialorder %v2569_v53, 0.0 }
 0x1c9   :  { %v1330_v54 = vmul.f32 0.2, %v2571_v60  ;;  %v2575_v42 = vadd.f32 %v1260_v5, %v922_v4  ;;  %1672 = vmatmul.mubr.bf16.gmra.mrb[52].mxu1 %v1379_v35  ;;  %vm1298_vm10 = vcmp.gt.f32.partialorder %v2571_v60, 0.0 }
 0x1ca   :  { %vm1299_vm11 = vcmp.gt.f32.partialorder %v2573_v41, 0.0  ;;  %v1331_v61 = vmul.f32 0.2, %v2573_v41  ;;  %v1361_v44 = vsel %vm1297_vm9, %v2569_v53, %v1329_v40 }
 0x1cb   :  { %vm1300_vm12 = vcmp.gt.f32.partialorder %v2575_v42, 0.0  ;;  %v1332_v43 = vmul.f32 0.2, %v2575_v42  ;;  %v1362_v46 = vsel %vm1298_vm10, %v2571_v60, %v1330_v54 }
 0x1cc   :  { %v1363_v45 = vsel %vm1299_vm11, %v2573_v41, %v1331_v61 }
 0x1cd   :  { %v1264_v55 = vpop.f32.mrb[28].mxu0  ;;  %v1364_v47 = vsel %vm1300_vm12, %v2575_v42, %v1332_v43  ;;  %v1381_v62 = vpack.c.bf16 %v1363_v45, %v1361_v44 }
 0x1ce   :  { %v2577_v48 = vadd.f32 %v1264_v55, %v926_v6  ;;  %v1266_v8 = vpop.f32.mrb[29].mxu0  ;;  %v1382_v63 = vpack.c.bf16 %v1364_v47, %v1362_v46 }
 0x1cf   :  { %v2579_v15 = vadd.f32 %v1266_v8, %v928_v7  ;;  %v1268_v19 = vpop.f32.mrb[30].mxu0 }
 0x1d0   :  { %v1333_v20 = vmul.f32 0.2, %v2577_v48  ;;  %v2581_v56 = vadd.f32 %v1268_v19, %v930_v51  ;;  %v1270_v10 = vpop.f32.mrb[31].mxu0  ;;  %1681 = vmatprep.mubr.bf16.mxu1 %v1382_v63  ;;  %vm1301_vm13 = vcmp.gt.f32.partialorder %v2577_v48, 0.0 }
 0x1d1   :  { %v1334_v21 = vmul.f32 0.2, %v2579_v15  ;;  %v2583_v49 = vadd.f32 %v1270_v10, %v932_v9  ;;  %1682 = vmatmul.mubr.bf16.gmra.mrb[56].mxu1 %v1381_v62  ;;  %vm1302_vm14 = vcmp.gt.f32.partialorder %v2579_v15, 0.0 }
 0x1d2   :  { %vm1303_vm15 = vcmp.gt.f32.partialorder %v2581_v56, 0.0  ;;  %v1335_v22 = vmul.f32 0.2, %v2581_v56  ;;  %v1365_v17 = vsel %vm1301_vm13, %v2577_v48, %v1333_v20 }
 0x1d3   :  { %vm1304_vm0 = vcmp.gt.f32.partialorder %v2583_v49, 0.0  ;;  %v1336_v11 = vmul.f32 0.2, %v2583_v49  ;;  %v1366_v50 = vsel %vm1302_vm14, %v2579_v15, %v1334_v21 }
 0x1d4   :  { %v1367_v23 = vsel %vm1303_vm15, %v2581_v56, %v1335_v22 }
 0x1d5   :  { %v1368_v57 = vsel %vm1304_vm0, %v2583_v49, %v1336_v11  ;;  %v1383_v12 = vpack.c.bf16 %v1367_v23, %v1365_v17 }
 0x1d6   :  { %v1384_v18 = vpack.c.bf16 %v1368_v57, %v1366_v50 }
 0x1d8   :  { %1691 = vmatprep.mubr.bf16.mxu1 %v1384_v18 }
 0x1d9   :  { %1692 = vmatmul.mubr.bf16.gmra.mrb[60].mxu1 %v1383_v12 }
 0x274   :  { %v1623_v28 = vpop.f32.mrb[32].mxu1 }
 0x275   :  { %v1624_v1 = vadd.f32 %v1623_v28, %v3907_v26  ;;  %v1625_v58 = vpop.f32.mrb[33].mxu1 }
 0x276   :  { %v1626_v29 = vadd.f32 %v1625_v58, %v3911_v27  ;;  %v1627_v30 = vpop.f32.mrb[34].mxu1 }
 0x277   :  { %v1734_v2 = vmul.f32 0.2, %v1624_v1  ;;  %v1628_v31 = vadd.f32 %v1627_v30, %v3907_v26  ;;  %v1629_v3 = vpop.f32.mrb[35].mxu1  ;;  %vm1702_vm1 = vcmp.gt.f32.partialorder %v1624_v1, 0.0 }
 0x278   :  { %v1735_v52 = vmul.f32 0.2, %v1626_v29  ;;  %v1630_v14 = vadd.f32 %v1629_v3, %v3911_v27  ;;  %vm1703_vm2 = vcmp.gt.f32.partialorder %v1626_v29, 0.0 }
 0x279   :  { %vm1704_vm3 = vcmp.gt.f32.partialorder %v1628_v31, 0.0  ;;  %v1736_v13 = vmul.f32 0.2, %v1628_v31  ;;  %v1766_v59 = vsel %vm1702_vm1, %v1624_v1, %v1734_v2 }
 0x27a   :  { %vm1705_vm4 = vcmp.gt.f32.partialorder %v1630_v14, 0.0  ;;  %v1737_v16 = vmul.f32 0.2, %v1630_v14  ;;  %v1767_v35 = vsel %vm1703_vm2, %v1626_v29, %v1735_v52 }
 0x27b   :  { %v1768_v32 = vsel %vm1704_vm3, %v1628_v31, %v1736_v13 }
 0x27c   :  { %v1798_v33 = vpack.c.bf16 %v1768_v32, %v1766_v59  ;;  %v1633_v34 = vpop.f32.mrb[36].mxu1  ;;  %v1769_v36 = vsel %vm1705_vm4, %v1630_v14, %v1737_v16 }
 0x27d   :  { %v1634_v53 = vadd.f32 %v1633_v34, %v3907_v26  ;;  %v1635_v37 = vpop.f32.mrb[37].mxu1  ;;  %v1799_v38 = vpack.c.bf16 %v1769_v36, %v1767_v35 }
 0x27e   :  { %v1636_v4 = vadd.f32 %v1635_v37, %v3911_v27  ;;  %v1637_v60 = vpop.f32.mrb[38].mxu1 }
 0x27f   :  { %v1738_v39 = vmul.f32 0.2, %v1634_v53  ;;  %v1638_v40 = vadd.f32 %v1637_v60, %v3907_v26  ;;  %v1639_v41 = vpop.f32.mrb[39].mxu1  ;;  %1981 = vmatprep.mubr.bf16.mxu1 %v1799_v38  ;;  %vm1706_vm5 = vcmp.gt.f32.partialorder %v1634_v53, 0.0 }
 0x280   :  { %v1739_v5 = vmul.f32 0.2, %v1636_v4  ;;  %v1640_v54 = vadd.f32 %v1639_v41, %v3911_v27  ;;  %1982 = vmatmul.mubr.bf16.vlgmr.msra.gmra.mrb[64].mxu1 %v1798_v33  ;;  %vm1707_vm6 = vcmp.gt.f32.partialorder %v1636_v4, 0.0 }
 0x281   :  { %vm1708_vm7 = vcmp.gt.f32.partialorder %v1638_v40, 0.0  ;;  %v1740_v42 = vmul.f32 0.2, %v1638_v40  ;;  %v1770_v6 = vsel %vm1706_vm5, %v1634_v53, %v1738_v39 }
 0x282   :  { %vm1709_vm8 = vcmp.gt.f32.partialorder %v1640_v54, 0.0  ;;  %v1741_v61 = vmul.f32 0.2, %v1640_v54  ;;  %v1771_v44 = vsel %vm1707_vm6, %v1636_v4, %v1739_v5 }
 0x283   :  { %v1772_v43 = vsel %vm1708_vm7, %v1638_v40, %v1740_v42 }
 0x284   :  { %v1643_v7 = vpop.f32.mrb[40].mxu1  ;;  %v1773_v45 = vsel %vm1709_vm8, %v1640_v54, %v1741_v61  ;;  %v1800_v55 = vpack.c.bf16 %v1772_v43, %v1770_v6 }
 0x285   :  { %v1644_v46 = vadd.f32 %v1643_v7, %v3907_v26  ;;  %v1645_v47 = vpop.f32.mrb[41].mxu1  ;;  %v1801_v62 = vpack.c.bf16 %v1773_v45, %v1771_v44 }
 0x286   :  { %v1646_v51 = vadd.f32 %v1645_v47, %v3911_v27  ;;  %v1647_v48 = vpop.f32.mrb[42].mxu1 }
 0x287   :  { %v1742_v8 = vmul.f32 0.2, %v1644_v46  ;;  %v1648_v63 = vadd.f32 %v1647_v48, %v3907_v26  ;;  %v1649_v9 = vpop.f32.mrb[43].mxu1  ;;  %1989 = vmatprep.mubr.bf16.mxu1 %v1801_v62  ;;  %vm1710_vm9 = vcmp.gt.f32.partialorder %v1644_v46, 0.0 }
 0x288   :  { %v1743_v15 = vmul.f32 0.2, %v1646_v51  ;;  %v1650_v19 = vadd.f32 %v1649_v9, %v3911_v27  ;;  %1990 = vmatmul.mubr.bf16.gmra.mrb[68].mxu1 %v1800_v55  ;;  %vm1711_vm10 = vcmp.gt.f32.partialorder %v1646_v51, 0.0 }
 0x289   :  { %vm1712_vm11 = vcmp.gt.f32.partialorder %v1648_v63, 0.0  ;;  %v1744_v20 = vmul.f32 0.2, %v1648_v63  ;;  %v1774_v10 = vsel %vm1710_vm9, %v1644_v46, %v1742_v8 }
 0x28a   :  { %vm1713_vm12 = vcmp.gt.f32.partialorder %v1650_v19, 0.0  ;;  %v1745_v56 = vmul.f32 0.2, %v1650_v19  ;;  %v1775_v22 = vsel %vm1711_vm10, %v1646_v51, %v1743_v15 }
 0x28b   :  { %v1776_v21 = vsel %vm1712_vm11, %v1648_v63, %v1744_v20 }
 0x28c   :  { %v1653_v49 = vpop.f32.mrb[44].mxu1  ;;  %v1777_v11 = vsel %vm1713_vm12, %v1650_v19, %v1745_v56  ;;  %v1802_v17 = vpack.c.bf16 %v1776_v21, %v1774_v10 }
 0x28d   :  { %v1654_v23 = vadd.f32 %v1653_v49, %v3907_v26  ;;  %v1655_v50 = vpop.f32.mrb[45].mxu1  ;;  %v1803_v57 = vpack.c.bf16 %v1777_v11, %v1775_v22 }
 0x28e   :  { %v1656_v12 = vadd.f32 %v1655_v50, %v3911_v27  ;;  %v1657_v18 = vpop.f32.mrb[46].mxu1 }
 0x28f   :  { %v1746_v24 = vmul.f32 0.2, %v1654_v23  ;;  %v1658_v0 = vadd.f32 %v1657_v18, %v3907_v26  ;;  %v1659_v25 = vpop.f32.mrb[47].mxu1  ;;  %1997 = vmatprep.mubr.bf16.mxu1 %v1803_v57  ;;  %vm1714_vm13 = vcmp.gt.f32.partialorder %v1654_v23, 0.0 }
 0x290   :  { %v1747_v28 = vmul.f32 0.2, %v1656_v12  ;;  %v1660_v1 = vadd.f32 %v1659_v25, %v3911_v27  ;;  %1998 = vmatmul.mubr.bf16.gmra.mrb[72].mxu1 %v1802_v17  ;;  %vm1715_vm14 = vcmp.gt.f32.partialorder %v1656_v12, 0.0 }
 0x291   :  { %vm1716_vm15 = vcmp.gt.f32.partialorder %v1658_v0, 0.0  ;;  %v1748_v58 = vmul.f32 0.2, %v1658_v0  ;;  %v1778_v30 = vsel %vm1714_vm13, %v1654_v23, %v1746_v24 }
 0x292   :  { %vm1717_vm0 = vcmp.gt.f32.partialorder %v1660_v1, 0.0  ;;  %v1749_v29 = vmul.f32 0.2, %v1660_v1  ;;  %v1779_v3 = vsel %vm1715_vm14, %v1656_v12, %v1747_v28 }
 0x293   :  { %v1780_v2 = vsel %vm1716_vm15, %v1658_v0, %v1748_v58 }
 0x294   :  { %v1663_v31 = vpop.f32.mrb[48].mxu1  ;;  %v1781_v52 = vsel %vm1717_vm0, %v1660_v1, %v1749_v29  ;;  %v1804_v14 = vpack.c.bf16 %v1780_v2, %v1778_v30 }
 0x295   :  { %v1664_v13 = vadd.f32 %v1663_v31, %v3907_v26  ;;  %v1665_v16 = vpop.f32.mrb[49].mxu1  ;;  %v1805_v59 = vpack.c.bf16 %v1781_v52, %v1779_v3 }
 0x296   :  { %v1666_v32 = vadd.f32 %v1665_v16, %v3911_v27  ;;  %v1667_v33 = vpop.f32.mrb[50].mxu1 }
 0x297   :  { %v1750_v34 = vmul.f32 0.2, %v1664_v13  ;;  %v1668_v35 = vadd.f32 %v1667_v33, %v3907_v26  ;;  %v1669_v36 = vpop.f32.mrb[51].mxu1  ;;  %2005 = vmatprep.mubr.bf16.mxu1 %v1805_v59  ;;  %vm1718_vm1 = vcmp.gt.f32.partialorder %v1664_v13, 0.0 }
 0x298   :  { %v1751_v53 = vmul.f32 0.2, %v1666_v32  ;;  %v1670_v37 = vadd.f32 %v1669_v36, %v3911_v27  ;;  %2006 = vmatmul.mubr.bf16.gmra.mrb[76].mxu1 %v1804_v14  ;;  %vm1719_vm2 = vcmp.gt.f32.partialorder %v1666_v32, 0.0 }
 0x299   :  { %vm1720_vm3 = vcmp.gt.f32.partialorder %v1668_v35, 0.0  ;;  %v1752_v38 = vmul.f32 0.2, %v1668_v35  ;;  %v1782_v60 = vsel %vm1718_vm1, %v1664_v13, %v1750_v34 }
 0x29a   :  { %vm1721_vm4 = vcmp.gt.f32.partialorder %v1670_v37, 0.0  ;;  %v1753_v4 = vmul.f32 0.2, %v1670_v37  ;;  %v1783_v41 = vsel %vm1719_vm2, %v1666_v32, %v1751_v53 }
 0x29b   :  { %v1784_v39 = vsel %vm1720_vm3, %v1668_v35, %v1752_v38  ;;  %v3948_v38 = vld [vmem:[%s3984_s6] ss:$0 sm:$0xff]  ;;  %s2952_s6 = smov [#allocation2]  }
 0x29c   :  { %v1673_v40 = vpop.f32.mrb[52].mxu1  ;;  %v1785_v5 = vsel %vm1721_vm4, %v1670_v37, %v1753_v4  ;;  %v1806_v54 = vpack.c.bf16 %v1784_v39, %v1782_v60  ;;  %s2211_s23 = sshll.u32 %s2952_s6, 4  ;;  %s2212_s23 = int_to_ptr.vmem [resolvable:$true] %s2211_s23 }
 0x29d   :  { %v1674_v42 = vadd.f32 %v1673_v40, %v3907_v26  ;;  %v1675_v61 = vpop.f32.mrb[53].mxu1  ;;  %v1807_v6 = vpack.c.bf16 %v1785_v5, %v1783_v41  ;;  %s2927_s24 = scalar_lea.vmem %s2212_s23, 1024  ;;  %p2932_p1 = scmp.lt.s32.totalorder %s2212_s23, %s2212_s23 }
 0x29e   :  { %v1676_v43 = vadd.f32 %v1675_v61, %v3911_v27  ;;  %v1677_v7 = vpop.f32.mrb[54].mxu1  ;;  %p2928_p0 = scmp.ne.s32.totalorder %s2212_s23, %s2927_s24  ;;  %p2933_p2 = scmp.lt.s32.totalorder %s2927_s24, %s2927_s24 }
 0x29f   :  { %v1754_v44 = vmul.f32 0.2, %v1674_v42  ;;  %v1678_v45 = vadd.f32 %v1677_v7, %v3907_v26  ;;  %v1679_v55 = vpop.f32.mrb[55].mxu1  ;;  %2013 = vmatprep.mubr.bf16.mxu1 %v1807_v6  ;;  %vm1722_vm5 = vcmp.gt.f32.partialorder %v1674_v42, 0.0 }
 0x2a0   :  { %v1755_v46 = vmul.f32 0.2, %v1676_v43  ;;  %v1680_v47 = vadd.f32 %v1679_v55, %v3911_v27  ;;  %2014 = vmatmul.mubr.bf16.gmra.mrb[80].mxu1 %v1806_v54  ;;  %vm1723_vm6 = vcmp.gt.f32.partialorder %v1676_v43, 0.0  ;;  %p2934_p3 = por %p2933_p2, %p2932_p1 }
 0x2a1   :  { %vm1724_vm7 = vcmp.gt.f32.partialorder %v1678_v45, 0.0  ;;  %v1756_v62 = vmul.f32 0.2, %v1678_v45  ;;  %v1786_v48 = vsel %vm1722_vm5, %v1674_v42, %v1754_v44 }
 0x2a2   :  { %vm1725_vm8 = vcmp.gt.f32.partialorder %v1680_v47, 0.0  ;;  %v1757_v51 = vmul.f32 0.2, %v1680_v47  ;;  %v1787_v9 = vsel %vm1723_vm6, %v1676_v43, %v1755_v46  ;;  %p2935_p4 = pnand %p2934_p3, %p2928_p0 }
 0x2a3   :  { %v1788_v8 = vsel %vm1724_vm7, %v1678_v45, %v1756_v62 }
 0x2a4   :  { %v1683_v63 = vpop.f32.mrb[56].mxu1  ;;  %v1789_v15 = vsel %vm1725_vm8, %v1680_v47, %v1757_v51  ;;  %v1808_v19 = vpack.c.bf16 %v1788_v8, %v1786_v48 }
 0x2a5   :  { %v1684_v20 = vadd.f32 %v1683_v63, %v3907_v26  ;;  %v1685_v56 = vpop.f32.mrb[57].mxu1  ;;  %v1809_v10 = vpack.c.bf16 %v1789_v15, %v1787_v9 }
 0x2a6   :  { %v1686_v21 = vadd.f32 %v1685_v56, %v3911_v27  ;;  %v1687_v49 = vpop.f32.mrb[58].mxu1 }
 0x2a7   :  { %v1758_v22 = vmul.f32 0.2, %v1684_v20  ;;  %v1688_v11 = vadd.f32 %v1687_v49, %v3907_v26  ;;  %v1689_v17 = vpop.f32.mrb[59].mxu1  ;;  %2021 = vmatprep.mubr.bf16.mxu1 %v1809_v10  ;;  %vm1726_vm9 = vcmp.gt.f32.partialorder %v1684_v20, 0.0 }
 0x2a8   :  { %v1759_v23 = vmul.f32 0.2, %v1686_v21  ;;  %v1690_v50 = vadd.f32 %v1689_v17, %v3911_v27  ;;  %2022 = vmatmul.mubr.bf16.gmra.mrb[84].mxu1 %v1808_v19  ;;  %vm1727_vm10 = vcmp.gt.f32.partialorder %v1686_v21, 0.0 }
 0x2a9   :  { %vm1728_vm11 = vcmp.gt.f32.partialorder %v1688_v11, 0.0  ;;  %v1760_v57 = vmul.f32 0.2, %v1688_v11  ;;  %v1790_v18 = vsel %vm1726_vm9, %v1684_v20, %v1758_v22 }
 0x2aa   :  { %vm1729_vm12 = vcmp.gt.f32.partialorder %v1690_v50, 0.0  ;;  %v1761_v12 = vmul.f32 0.2, %v1690_v50  ;;  %v1791_v25 = vsel %vm1727_vm10, %v1686_v21, %v1759_v23 }
 0x2ab   :  { %v1792_v24 = vsel %vm1728_vm11, %v1688_v11, %v1760_v57 }
 0x2ac   :  { %v1693_v0 = vpop.f32.mrb[60].mxu1  ;;  %v1793_v28 = vsel %vm1729_vm12, %v1690_v50, %v1761_v12  ;;  %v1810_v1 = vpack.c.bf16 %v1792_v24, %v1790_v18 }
 0x2ad   :  { %v1694_v58 = vadd.f32 %v1693_v0, %v3907_v26  ;;  %v1695_v29 = vpop.f32.mrb[61].mxu1  ;;  %v1811_v30 = vpack.c.bf16 %v1793_v28, %v1791_v25 }
 0x2ae   :  { %v1696_v2 = vadd.f32 %v1695_v29, %v3911_v27  ;;  %v1697_v31 = vpop.f32.mrb[62].mxu1 }
 0x2af   :  { %v1762_v3 = vmul.f32 0.2, %v1694_v58  ;;  %v1698_v52 = vadd.f32 %v1697_v31, %v3907_v26  ;;  %v1699_v14 = vpop.f32.mrb[63].mxu1  ;;  %2029 = vmatprep.mubr.bf16.mxu1 %v1811_v30  ;;  %vm1730_vm13 = vcmp.gt.f32.partialorder %v1694_v58, 0.0 }
 0x2b0   :  { %v1763_v13 = vmul.f32 0.2, %v1696_v2  ;;  %v1700_v16 = vadd.f32 %v1699_v14, %v3911_v27  ;;  %2030 = vmatmul.mubr.bf16.gmra.mrb[88].mxu1 %v1810_v1  ;;  %vm1731_vm14 = vcmp.gt.f32.partialorder %v1696_v2, 0.0 }
 0x2b1   :  { %vm1732_vm15 = vcmp.gt.f32.partialorder %v1698_v52, 0.0  ;;  %v1764_v59 = vmul.f32 0.2, %v1698_v52  ;;  %v1794_v33 = vsel %vm1730_vm13, %v1694_v58, %v1762_v3 }
 0x2b2   :  { %vm1733_vm0 = vcmp.gt.f32.partialorder %v1700_v16, 0.0  ;;  %v1765_v32 = vmul.f32 0.2, %v1700_v16  ;;  %v1795_v35 = vsel %vm1731_vm14, %v1696_v2, %v1763_v13 }
 0x2b3   :  { %v1796_v34 = vsel %vm1732_vm15, %v1698_v52, %v1764_v59 }
 0x2b4   :  { %v1797_v36 = vsel %vm1733_vm0, %v1700_v16, %v1765_v32  ;;  %v1812_v53 = vpack.c.bf16 %v1796_v34, %v1794_v33 }
 0x2b5   :  { %v1813_v37 = vpack.c.bf16 %v1797_v36, %v1795_v35 }
 0x2b7   :  { %2037 = vmatprep.mubr.bf16.mxu1 %v1813_v37 }
 0x2b8   :  { %2038 = vmatmul.mubr.bf16.gmra.mrb[92].mxu1 %v1812_v53 }
 0x353   :  { %v2472_v26 = vpop.f32.mrb[64].mxu1 }
 0x354   :  { %v2473_v27 = vpop.f32.mrb[65].mxu1 }
 0x355   :  { %v2474_v4 = vadd.f32 %v2473_v27, %v2472_v26  ;;  %v2475_v60 = vpop.f32.mrb[66].mxu1 }
 0x356   :  { %v2476_v39 = vpop.f32.mrb[67].mxu1 }
 0x357   :  { %v1984_v40 = vadd.f32 %v2474_v4, %v3948_v38  ;;  %v2477_v41 = vadd.f32 %v2476_v39, %v2475_v60 }
 0x359   :  { %v2046_v5 = vsub.f32 0.0, %v1984_v40  ;;  %v1987_v54 = vadd.f32 %v2477_v41, %v3948_v38 }
 0x35b   :  { %v2062_v42 = vmul.f32 1.442695, %v2046_v5  ;;  %v2047_v61 = vsub.f32 0.0, %v1987_v54  ;;  %v2478_v6 = vpop.f32.mrb[68].mxu1 }
 0x35c   :  { %v2479_v43 = vpop.f32.mrb[69].mxu1 }
 0x35d   :  { %2863 = vpow2.f32 %v2062_v42  ;;  %v2064_v7 = vmul.f32 1.442695, %v2047_v61  ;;  %v2480_v44 = vadd.f32 %v2479_v43, %v2478_v6  ;;  %v2481_v45 = vpop.f32.mrb[70].mxu1 }
 0x35e   :  { %v2482_v55 = vpop.f32.mrb[71].mxu1 }
 0x35f   :  { %2865 = vpow2.f32 %v2064_v7  ;;  %v1992_v46 = vadd.f32 %v2480_v44, %v3948_v38  ;;  %v2483_v47 = vadd.f32 %v2482_v55, %v2481_v45 }
 0x361   :  { %v2048_v62 = vsub.f32 0.0, %v1992_v46  ;;  %v1995_v51 = vadd.f32 %v2483_v47, %v3948_v38 }
 0x363   :  { %v2066_v48 = vmul.f32 1.442695, %v2048_v62  ;;  %v2049_v8 = vsub.f32 0.0, %v1995_v51  ;;  %v2484_v63 = vpop.f32.mrb[72].mxu1 }
 0x364   :  { %v2485_v9 = vpop.f32.mrb[73].mxu1 }
 0x365   :  { %2867 = vpow2.f32 %v2066_v48  ;;  %v2068_v15 = vmul.f32 1.442695, %v2049_v8  ;;  %v2486_v19 = vadd.f32 %v2485_v9, %v2484_v63  ;;  %v2487_v20 = vpop.f32.mrb[74].mxu1 }
 0x366   :  { %v2488_v56 = vpop.f32.mrb[75].mxu1 }
 0x367   :  { %v2864_v10 = vpop.eup %2863  ;;  %2869 = vpow2.f32 %v2068_v15  ;;  %v2000_v21 = vadd.f32 %v2486_v19, %v3948_v38  ;;  %v2489_v49 = vadd.f32 %v2488_v56, %v2487_v20 }
 0x368   :  { %v2094_v22 = vadd.f32 1.0, %v2864_v10 }
 0x369   :  { %v2866_v11 = vpop.eup %2865  ;;  %v2050_v17 = vsub.f32 0.0, %v2000_v21  ;;  %v2003_v23 = vadd.f32 %v2489_v49, %v3948_v38 }
 0x36a   :  { %v2095_v50 = vadd.f32 1.0, %v2866_v11  ;;  %2871 = vrcp.f32 %v2094_v22 }
 0x36b   :  { %v2070_v57 = vmul.f32 1.442695, %v2050_v17  ;;  %v2051_v12 = vsub.f32 0.0, %v2003_v23  ;;  %v2490_v18 = vpop.f32.mrb[76].mxu1 }
 0x36c   :  { %2873 = vrcp.f32 %v2095_v50  ;;  %v2491_v24 = vpop.f32.mrb[77].mxu1 }
 0x36d   :  { %2875 = vpow2.f32 %v2070_v57  ;;  %v2072_v0 = vmul.f32 1.442695, %v2051_v12  ;;  %v2492_v25 = vadd.f32 %v2491_v24, %v2490_v18  ;;  %v2493_v28 = vpop.f32.mrb[78].mxu1 }
 0x36e   :  { %v2494_v1 = vpop.f32.mrb[79].mxu1 }
 0x36f   :  { %v2868_v58 = vpop.eup %2867  ;;  %2877 = vpow2.f32 %v2072_v0  ;;  %v2008_v29 = vadd.f32 %v2492_v25, %v3948_v38  ;;  %v2495_v30 = vadd.f32 %v2494_v1, %v2493_v28 }
 0x370   :  { %v2096_v2 = vadd.f32 1.0, %v2868_v58 }
 0x371   :  { %v2870_v31 = vpop.eup %2869  ;;  %v2052_v3 = vsub.f32 0.0, %v2008_v29  ;;  %v2011_v52 = vadd.f32 %v2495_v30, %v3948_v38 }
 0x372   :  { %v2097_v14 = vadd.f32 1.0, %v2870_v31  ;;  %2879 = vrcp.f32 %v2096_v2 }
 0x373   :  { %v2074_v13 = vmul.f32 1.442695, %v2052_v3  ;;  %v2053_v16 = vsub.f32 0.0, %v2011_v52  ;;  %v2496_v59 = vpop.f32.mrb[80].mxu1 }
 0x374   :  { %2881 = vrcp.f32 %v2097_v14  ;;  %v2497_v32 = vpop.f32.mrb[81].mxu1  ;;  %v2872_v33 = vpop.eup %2871 }
 0x375   :  { %2883 = vpow2.f32 %v2074_v13  ;;  %v2076_v34 = vmul.f32 1.442695, %v2053_v16  ;;  %v2498_v35 = vadd.f32 %v2497_v32, %v2496_v59  ;;  %v2499_v36 = vpop.f32.mrb[82].mxu1 }
 0x376   :  { %v2874_v53 = vpop.eup %2873  ;;  %v2500_v37 = vpop.f32.mrb[83].mxu1 }
 0x377   :  { %v2876_v26 = vpop.eup %2875  ;;  %v2412_v27 = vpack.c.bf16 %v2874_v53, %v2872_v33  ;;  %2885 = vpow2.f32 %v2076_v34  ;;  %v2016_v4 = vadd.f32 %v2498_v35, %v3948_v38  ;;  %v2501_v60 = vadd.f32 %v2500_v37, %v2499_v36 }
 0x378   :  { %v2098_v39 = vadd.f32 1.0, %v2876_v26 }
 0x379   :  { %v2878_v40 = vpop.eup %2877  ;;  %2413 = vst [vmem:[#allocation2] sm:$0xff] %v2412_v27   ;;  %v2054_v41 = vsub.f32 0.0, %v2016_v4  ;;  %v2019_v5 = vadd.f32 %v2501_v60, %v3948_v38 }
 0x37a   :  { %v2099_v54 = vadd.f32 1.0, %v2878_v40  ;;  %2887 = vrcp.f32 %v2098_v39 }
 0x37b   :  { %v2078_v42 = vmul.f32 1.442695, %v2054_v41  ;;  %v2055_v61 = vsub.f32 0.0, %v2019_v5  ;;  %v2502_v6 = vpop.f32.mrb[84].mxu1 }
 0x37c   :  { %2889 = vrcp.f32 %v2099_v54  ;;  %v2503_v43 = vpop.f32.mrb[85].mxu1  ;;  %v2880_v7 = vpop.eup %2879 }
 0x37d   :  { %2891 = vpow2.f32 %v2078_v42  ;;  %v2080_v44 = vmul.f32 1.442695, %v2055_v61  ;;  %v2504_v45 = vadd.f32 %v2503_v43, %v2502_v6  ;;  %v2505_v55 = vpop.f32.mrb[86].mxu1 }
 0x37e   :  { %v2882_v46 = vpop.eup %2881  ;;  %v2506_v47 = vpop.f32.mrb[87].mxu1 }
 0x37f   :  { %v2884_v62 = vpop.eup %2883  ;;  %v2417_v51 = vpack.c.bf16 %v2882_v46, %v2880_v7  ;;  %2893 = vpow2.f32 %v2080_v44  ;;  %v2024_v48 = vadd.f32 %v2504_v45, %v3948_v38  ;;  %v2507_v8 = vadd.f32 %v2506_v47, %v2505_v55 }
 0x380   :  { %v2100_v63 = vadd.f32 1.0, %v2884_v62 }
 0x381   :  { %v2886_v9 = vpop.eup %2885  ;;  %2449 = vst [vmem:[#allocation2 + $0x8] sm:$0xff] %v2417_v51   ;;  %v2056_v15 = vsub.f32 0.0, %v2024_v48  ;;  %v2027_v19 = vadd.f32 %v2507_v8, %v3948_v38 }
 0x382   :  { %v2101_v20 = vadd.f32 1.0, %v2886_v9  ;;  %2895 = vrcp.f32 %v2100_v63 }
 0x383   :  { %v2082_v56 = vmul.f32 1.442695, %v2056_v15  ;;  %v2057_v10 = vsub.f32 0.0, %v2027_v19  ;;  %v2508_v21 = vpop.f32.mrb[88].mxu1 }
 0x384   :  { %2897 = vrcp.f32 %v2101_v20  ;;  %v2509_v49 = vpop.f32.mrb[89].mxu1  ;;  %v2888_v22 = vpop.eup %2887 }
 0x385   :  { %2899 = vpow2.f32 %v2082_v56  ;;  %v2084_v11 = vmul.f32 1.442695, %v2057_v10  ;;  %v2510_v17 = vadd.f32 %v2509_v49, %v2508_v21  ;;  %v2511_v23 = vpop.f32.mrb[90].mxu1 }
 0x386   :  { %v2890_v50 = vpop.eup %2889  ;;  %v2512_v57 = vpop.f32.mrb[91].mxu1 }
 0x387   :  { %v2892_v12 = vpop.eup %2891  ;;  %v2422_v18 = vpack.c.bf16 %v2890_v50, %v2888_v22  ;;  %2901 = vpow2.f32 %v2084_v11  ;;  %v2032_v24 = vadd.f32 %v2510_v17, %v3948_v38  ;;  %v2513_v0 = vadd.f32 %v2512_v57, %v2511_v23 }
 0x388   :  { %v2102_v25 = vadd.f32 1.0, %v2892_v12 }
 0x389   :  { %v2894_v28 = vpop.eup %2893  ;;  %2450 = vst [vmem:[#allocation2 + $0x10] sm:$0xff] %v2422_v18   ;;  %v2058_v1 = vsub.f32 0.0, %v2032_v24  ;;  %v2035_v58 = vadd.f32 %v2513_v0, %v3948_v38 }
 0x38a   :  { %v2103_v29 = vadd.f32 1.0, %v2894_v28  ;;  %2903 = vrcp.f32 %v2102_v25 }
 0x38b   :  { %v2086_v30 = vmul.f32 1.442695, %v2058_v1  ;;  %v2059_v2 = vsub.f32 0.0, %v2035_v58  ;;  %v2514_v31 = vpop.f32.mrb[92].mxu1 }
 0x38c   :  { %2905 = vrcp.f32 %v2103_v29  ;;  %v2515_v3 = vpop.f32.mrb[93].mxu1  ;;  %v2896_v52 = vpop.eup %2895 }
 0x38d   :  { %2907 = vpow2.f32 %v2086_v30  ;;  %v2088_v14 = vmul.f32 1.442695, %v2059_v2  ;;  %v2516_v13 = vadd.f32 %v2515_v3, %v2514_v31  ;;  %v2517_v16 = vpop.f32.mrb[94].mxu1 }
 0x38e   :  { %v2898_v59 = vpop.eup %2897  ;;  %v2518_v32 = vpop.f32.mrb[95].mxu1 }
 0x38f   :  { %v2900_v33 = vpop.eup %2899  ;;  %v2427_v34 = vpack.c.bf16 %v2898_v59, %v2896_v52  ;;  %2909 = vpow2.f32 %v2088_v14  ;;  %v2040_v35 = vadd.f32 %v2516_v13, %v3948_v38  ;;  %v2519_v36 = vadd.f32 %v2518_v32, %v2517_v16 }
 0x390   :  { %v2104_v53 = vadd.f32 1.0, %v2900_v33 }
 0x391   :  { %v2902_v37 = vpop.eup %2901  ;;  %2451 = vst [vmem:[#allocation2 + $0x18] sm:$0xff] %v2427_v34   ;;  %v2060_v26 = vsub.f32 0.0, %v2040_v35  ;;  %v2043_v27 = vadd.f32 %v2519_v36, %v3948_v38 }
 0x392   :  { %v2105_v4 = vadd.f32 1.0, %v2902_v37  ;;  %2911 = vrcp.f32 %v2104_v53 }
 0x393   :  { %v2090_v60 = vmul.f32 1.442695, %v2060_v26  ;;  %v2061_v39 = vsub.f32 0.0, %v2043_v27 }
 0x394   :  { %2913 = vrcp.f32 %v2105_v4  ;;  %v2904_v40 = vpop.eup %2903 }
 0x395   :  { %2915 = vpow2.f32 %v2090_v60  ;;  %v2092_v41 = vmul.f32 1.442695, %v2061_v39 }
 0x396   :  { %v2906_v5 = vpop.eup %2905 }
 0x397   :  { %v2908_v54 = vpop.eup %2907  ;;  %v2432_v42 = vpack.c.bf16 %v2906_v5, %v2904_v40  ;;  %2917 = vpow2.f32 %v2092_v41 }
 0x398   :  { %v2106_v61 = vadd.f32 1.0, %v2908_v54 }
 0x399   :  { %v2910_v6 = vpop.eup %2909  ;;  %2452 = vst [vmem:[#allocation2 + $0x20] sm:$0xff] %v2432_v42  }
 0x39a   :  { %v2107_v43 = vadd.f32 1.0, %v2910_v6  ;;  %2919 = vrcp.f32 %v2106_v61 }
 0x39c   :  { %2921 = vrcp.f32 %v2107_v43  ;;  %v2912_v7 = vpop.eup %2911 }
 0x39e   :  { %v2914_v38 = vpop.eup %2913 }
 0x39f   :  { %v2916_v44 = vpop.eup %2915  ;;  %v2437_v45 = vpack.c.bf16 %v2914_v38, %v2912_v7 }
 0x3a0   :  { %v2108_v55 = vadd.f32 1.0, %v2916_v44 }
 0x3a1   :  { %v2918_v46 = vpop.eup %2917  ;;  %2453 = vst [vmem:[#allocation2 + $0x28] sm:$0xff] %v2437_v45  }
 0x3a2   :  { %v2109_v47 = vadd.f32 1.0, %v2918_v46  ;;  %2923 = vrcp.f32 %v2108_v55 }
 0x3a4   :  { %2925 = vrcp.f32 %v2109_v47  ;;  %v2920_v62 = vpop.eup %2919 }
 0x3a6   :  { %v2922_v51 = vpop.eup %2921 }
 0x3a7   :  { %v2442_v48 = vpack.c.bf16 %v2922_v51, %v2920_v62 }
 0x3a9   :  { %2454 = vst [vmem:[#allocation2 + $0x30] sm:$0xff] %v2442_v48  }
 0x3ac   :  { %v2924_v8 = vpop.eup %2923 }
 0x3ae   :  { %v2926_v63 = vpop.eup %2925 }
 0x3af   :  { %v2447_v9 = vpack.c.bf16 %v2926_v63, %v2924_v8 }
 0x3b1   :  { %2455 = vst [vmem:[#allocation2 + $0x38] sm:$0xff] %v2447_v9  }
 0x3b2   :  { %2938 = shalt.err (!%p2935_p4)
}
 0x3b3   :  { %s2939_s27 = scalar_lea.hbm %s3985_s7, 1024 }
 0x3b4   :  { %p2940_p5 = scmp.ne.s32.totalorder %s3985_s7, %s2939_s27  ;;  %p2943_p6 = scmp.lt.u32.totalorder %s2939_s27, %s3985_s7 }
 0x3b6   :  { %p2945_p7 = pnand %p2943_p6, %p2940_p5 }
 0x3b8   :  { %2948 = shalt.err (!%p2945_p7)
}
 0x3b9   :  { %s2953_s9 = smov 64   ;;  %s2954_s10 = smov 4  }
 0x3ba   :  { %2217 = dma.vmem_to_hbm [thread:$0]  %s2212_s23, 1024, %s3985_s7, [#allocation3], %s2953_s9, %s2953_s9, %s2954_s10  }
 0x3bb   :  { %2949 = dma.done.wait [#allocation3], 1024  }
 0x3bc   :  { %2950 = vsyncadd [#allocation3], 4294966272 }
 0x3bd   :  { %2221 = vsyncpa [#allocation3], 1 }

</bundles_post_ra>
